<compile_context>
chip_gen: v6e
topology: v6e:2x2x1
jax: 0.10.0
libtpu: 0.0.40
codegen_flags: <defaults>
</compile_context>

<pallas_src>
import math
from functools import partial

import jax
import jax.numpy as jnp
from jax.experimental import pallas as pl
from jax.experimental.pallas import tpu as pltpu  # noqa: F401  (kept for parity / future tiling)

# ---- small, module-consistent shapes -------------------------------------
BATCH = 2
SEQ = 8            # "max_length"-style sequence length
VOCAB = 100        # fallback vocab_size in the module
D_MODEL = 32       # embedding_dim
N_HEADS = 4
N_LAYERS = 2
FFN_DIM = D_MODEL * 4
OUT_DIM = 16       # output_dim
LN_EPS = 1e-5      # nn.TransformerEncoderLayer default layer_norm_eps

HEAD_DIM = D_MODEL // N_HEADS
ATTN_SCALE = 1.0 / math.sqrt(HEAD_DIM)
W_SMALL_COLS = 4 * D_MODEL + FFN_DIM   # [wq.T | wk.T | wv.T | wo.T | w1.T]
VEC_ROWS, VEC_COLS = 8, 128            # packed biases / LN params: one vreg


# ---------------------------------------------------------------------------
# Pallas kernel (all layers + pool + projection fused, no grid)
# ---------------------------------------------------------------------------
def _layer_norm(x, w, b, eps=LN_EPS):
    mu = jnp.mean(x, axis=-1, keepdims=True)
    var = jnp.mean(jnp.square(x - mu), axis=-1, keepdims=True)
    return (x - mu) * jax.lax.rsqrt(var + eps) * w + b


def fused_encoder_kernel(x_ref, wsm_ref, w2t_ref, vec_ref, pw_ref, pb_ref,
                         out_ref, *, num_heads, n_layers):
    x3 = x_ref[...]                       # (B, S, D) f32
    B, S, D = x3.shape
    hd = D // num_heads

    # Activation carried purely in values (vregs) across all layers.
    x2 = x3.reshape(B * S, D)             # (B*S, D) f32

    for layer in range(n_layers):         # fully unrolled (static trip count)
        wsm = wsm_ref[layer]              # (D, 4D+FFN) bf16, pre-transposed
        w2t = w2t_ref[layer]              # (FFN, D)    bf16, pre-transposed
        vec = vec_ref[layer]              # (8, 128)    f32 biases / LN
        ffn = w2t.shape[0]

        w_qkv = wsm[:, :3 * D]            # (D, 3D)  (Wq already pre-scaled)
        w_o = wsm[:, 3 * D:4 * D]         # (D, D)
        w_1 = wsm[:, 4 * D:4 * D + ffn]   # (D, FFN)

        b_qkv = vec[0:1, :3 * D]
        b_o = vec[1:2, :D]
        b_1 = vec[2:3, :ffn]
        b_2 = vec[3:4, :D]
        ln1w, ln1b = vec[4:5, :D], vec[5:6, :D]
        ln2w, ln2b = vec[6:7, :D], vec[7:8, :D]

        # --- fused QKV projection: one MXU push with N = 3*D output lanes ---
        qkv = jnp.dot(x2.astype(jnp.bfloat16), w_qkv,
                      preferred_element_type=jnp.float32) + b_qkv   # (B*S,3D)

        # 1/sqrt(head_dim) is folded into Wq / bq at pack time.
        q3 = qkv[:, 0 * D:1 * D].reshape(B, S, D).astype(jnp.bfloat16)
        k3 = qkv[:, 1 * D:2 * D].reshape(B, S, D).astype(jnp.bfloat16)
        v3 = qkv[:, 2 * D:3 * D].reshape(B, S, D).astype(jnp.bfloat16)

        # --- multi-head self attention (softmax in f32, reciprocal on EUP) --
        head_outs = []
        for h in range(num_heads):
            sl = slice(h * hd, (h + 1) * hd)
            s = jnp.einsum('bqd,bkd->bqk', q3[..., sl], k3[..., sl],
                           preferred_element_type=jnp.float32)
            s = s - jnp.max(s, axis=-1, keepdims=True)
            p = jnp.exp(s)
            p = p * pl.reciprocal(jnp.sum(p, axis=-1, keepdims=True),
                                  approx=True)
            head_outs.append(
                jnp.einsum('bqk,bkd->bqd', p.astype(jnp.bfloat16), v3[..., sl],
                           preferred_element_type=jnp.float32))
        ctx = jnp.concatenate(head_outs, axis=-1).reshape(B * S, D)

        attn = jnp.dot(ctx.astype(jnp.bfloat16), w_o,
                       preferred_element_type=jnp.float32) + b_o

        # residual + LayerNorm1 (post-norm; dropout = identity in eval)
        y = _layer_norm(x2 + attn, ln1w, ln1b)

        # --- feed-forward (Linear -> ReLU -> Linear) -------------------------
        h1 = jnp.maximum(jnp.dot(y.astype(jnp.bfloat16), w_1,
                                 preferred_element_type=jnp.float32) + b_1, 0.0)
        h2 = jnp.dot(h1.astype(jnp.bfloat16), w2t,
                     preferred_element_type=jnp.float32) + b_2

        # residual + LayerNorm2 -> next layer's input (stays in vregs)
        x2 = _layer_norm(y + h2, ln2w, ln2b)

    # --- fused mean-pool + final projection ---------------------------------
    # Only the (B, OUT_DIM) result ever goes back to HBM.
    pooled = jnp.mean(x2.reshape(B, S, D), axis=1)                  # (B, D)
    out_ref[...] = (jnp.dot(pooled.astype(jnp.bfloat16), pw_ref[...],
                            preferred_element_type=jnp.float32)
                    + pb_ref[...])


# ---------------------------------------------------------------------------
# pallas_call wrapper (grid-free: one invocation, whole arrays in VMEM)
# ---------------------------------------------------------------------------
def run_fused_encoder(x, packed):
    wsm, w2t, vec, pw, pb = packed
    kernel = partial(fused_encoder_kernel, num_heads=N_HEADS, n_layers=N_LAYERS)
    # Total VMEM working set (< 100 KB) is trivially within budget on every
    # generation, so no BlockSpec tiling is needed: every operand is mapped in
    # full into VMEM and the kernel runs exactly once.
    return pl.pallas_call(
        kernel,
        out_shape=jax.ShapeDtypeStruct((BATCH, OUT_DIM), jnp.float32),
    )(x, wsm, w2t, vec, pw, pb)


# ---------------------------------------------------------------------------
# Parameters (deterministic synthetic init), packing, and glue
# ---------------------------------------------------------------------------
def positional_encoding(seq, d_model):
    pos = jnp.arange(seq, dtype=jnp.float32)[:, None]
    div = jnp.exp(jnp.arange(0, d_model, 2, dtype=jnp.float32) *
                  (-math.log(10000.0) / d_model))
    pe = jnp.zeros((seq, d_model), jnp.float32)
    pe = pe.at[:, 0::2].set(jnp.sin(pos * div))
    pe = pe.at[:, 1::2].set(jnp.cos(pos * div))
    return pe


def init_params(key):
    n_per_layer = 8
    keys = jax.random.split(key, 3 + N_LAYERS * n_per_layer)

    def w(k, shape, scale=0.05):
        return jax.random.normal(k, shape, jnp.float32) * scale

    params = {
        'embedding': w(keys[0], (VOCAB, D_MODEL), 0.02),
        'proj_w': w(keys[1], (OUT_DIM, D_MODEL)),     # PyTorch (out, in)
        'proj_b': w(keys[2], (OUT_DIM,), 0.01),
        'layers': [],
    }
    for i in range(N_LAYERS):
        lk = keys[3 + i * n_per_layer: 3 + (i + 1) * n_per_layer]
        params['layers'].append(dict(
            wq=w(lk[0], (D_MODEL, D_MODEL)),
            wk=w(lk[1], (D_MODEL, D_MODEL)),
            wv=w(lk[2], (D_MODEL, D_MODEL)),
            bq=jnp.zeros((D_MODEL,), jnp.float32),
            bk=jnp.zeros((D_MODEL,), jnp.float32),
            bv=jnp.zeros((D_MODEL,), jnp.float32),
            wo=w(lk[3], (D_MODEL, D_MODEL)),
            bo=w(lk[4], (D_MODEL,), 0.01),
            ln1w=jnp.ones((D_MODEL,), jnp.float32),
            ln1b=jnp.zeros((D_MODEL,), jnp.float32),
            w1=w(lk[5], (FFN_DIM, D_MODEL)),
            b1=w(lk[6], (FFN_DIM,), 0.01),
            w2=w(lk[7], (D_MODEL, FFN_DIM)),
            b2=jnp.zeros((D_MODEL,), jnp.float32),
            ln2w=jnp.ones((D_MODEL,), jnp.float32),
            ln2b=jnp.zeros((D_MODEL,), jnp.float32),
        ))
    return params


def pack_params(params):
    """Pack per-layer params into 3 stacked slabs (+ projection) for the kernel.

    Weights are pre-transposed so the kernel computes plain x @ W (== x @ W.T
    in PyTorch convention) with lane-dense outputs, stored in bf16 for
    MXU-native matmuls (f32 accumulation in-kernel).  The 1/sqrt(head_dim)
    attention scale is folded into Wq / bq here so the kernel never scales.
    """
    # The (8,128) bias/LN vreg packing assumes these fit on one 128-lane row.
    assert 3 * D_MODEL <= VEC_COLS, "3*D_MODEL must fit in one 128-lane row"
    assert FFN_DIM <= VEC_COLS, "FFN_DIM must fit in one 128-lane row"

    wsm_list, w2t_list, vec_list = [], [], []
    for lp in params['layers']:
        wq_s = lp['wq'] * ATTN_SCALE
        bq_s = lp['bq'] * ATTN_SCALE
        wsm = jnp.concatenate(
            [wq_s.T, lp['wk'].T, lp['wv'].T, lp['wo'].T, lp['w1'].T],
            axis=1)                                           # (D, 4D+FFN)
        w2t = lp['w2'].T                                      # (FFN, D)
        vec = jnp.zeros((VEC_ROWS, VEC_COLS), jnp.float32)
        vec = vec.at[0, :3 * D_MODEL].set(
            jnp.concatenate([bq_s, lp['bk'], lp['bv']]))
        vec = vec.at[1, :D_MODEL].set(lp['bo'])
        vec = vec.at[2, :FFN_DIM].set(lp['b1'])
        vec = vec.at[3, :D_MODEL].set(lp['b2'])
        vec = vec.at[4, :D_MODEL].set(lp['ln1w'])
        vec = vec.at[5, :D_MODEL].set(lp['ln1b'])
        vec = vec.at[6, :D_MODEL].set(lp['ln2w'])
        vec = vec.at[7, :D_MODEL].set(lp['ln2b'])
        wsm_list.append(wsm)
        w2t_list.append(w2t)
        vec_list.append(vec)
    wsm_stack = jnp.stack(wsm_list).astype(jnp.bfloat16)      # (L, D, 4D+FFN)
    w2t_stack = jnp.stack(w2t_list).astype(jnp.bfloat16)      # (L, FFN, D)
    vec_stack = jnp.stack(vec_list)                           # (L, 8, 128) f32
    pw = params['proj_w'].T.astype(jnp.bfloat16)              # (D, OUT)
    pb = params['proj_b'][None, :]                            # (1, OUT) f32
    return wsm_stack, w2t_stack, vec_stack, pw, pb


def smiles_transformer_encoder_forward(input_ids, params, packed):
    # embedding lookup + positional encoding (JAX glue; dropout identity in eval)
    x = jnp.take(params['embedding'], input_ids, axis=0)          # (B, S, D)
    x = (x + positional_encoding(SEQ, D_MODEL)[None]).astype(jnp.float32)
    # all encoder layers + mean pool + projection in one fused Pallas kernel
    return run_fused_encoder(x, packed)


if __name__ == "__main__":
    key = jax.random.PRNGKey(0)
    k_param, k_ids = jax.random.split(key)
    params = init_params(k_param)
    packed = pack_params(params)
    input_ids = jax.random.randint(k_ids, (BATCH, SEQ), 0, VOCAB, dtype=jnp.int32)

    out = smiles_transformer_encoder_forward(input_ids, params, packed)
    out = jax.block_until_ready(out)
    assert out.shape == (BATCH, OUT_DIM), out.shape
    assert bool(jnp.all(jnp.isfinite(out)))
    print("KERNEL_OK")
</pallas_src>

<mosaic_0001>
module attributes {stable_mosaic.version = 11 : i64} {
  func.func @fused_encoder_kernel(%arg0: memref<2x8x32xf32, #tpu.memory_space<vmem>>, %arg1: memref<2x32x256xbf16, #tpu.memory_space<vmem>>, %arg2: memref<2x128x32xbf16, #tpu.memory_space<vmem>>, %arg3: memref<2x8x128xf32, #tpu.memory_space<vmem>>, %arg4: memref<32x16xbf16, #tpu.memory_space<vmem>>, %arg5: memref<1x16xf32, #tpu.memory_space<vmem>>, %arg6: memref<2x16xf32, #tpu.memory_space<vmem>>) attributes {dimension_semantics = [], scalar_prefetch = 0 : i64, scratch_operands = 0 : i64, tpu.core_type = #tpu.core_type<tc>} {
    %c0 = arith.constant 0 : index
    %c0_0 = arith.constant 0 : index
    %c0_1 = arith.constant 0 : index
    %0 = vector.load %arg0[%c0, %c0_0, %c0_1] : memref<2x8x32xf32, #tpu.memory_space<vmem>>, vector<2x8x32xf32>
    %1 = vector.shape_cast %0 : vector<2x8x32xf32> to vector<16x32xf32>
    %c0_2 = arith.constant 0 : index
    %c0_3 = arith.constant 0 : index
    %c0_4 = arith.constant 0 : index
    %2 = vector.load %arg1[%c0_2, %c0_3, %c0_4] : memref<2x32x256xbf16, #tpu.memory_space<vmem>>, vector<1x32x256xbf16>
    %3 = vector.shape_cast %2 : vector<1x32x256xbf16> to vector<32x256xbf16>
    %c0_5 = arith.constant 0 : index
    %c0_6 = arith.constant 0 : index
    %c0_7 = arith.constant 0 : index
    %4 = vector.load %arg2[%c0_5, %c0_6, %c0_7] : memref<2x128x32xbf16, #tpu.memory_space<vmem>>, vector<1x128x32xbf16>
    %5 = vector.shape_cast %4 : vector<1x128x32xbf16> to vector<128x32xbf16>
    %c0_8 = arith.constant 0 : index
    %c0_9 = arith.constant 0 : index
    %c0_10 = arith.constant 0 : index
    %6 = vector.load %arg3[%c0_8, %c0_9, %c0_10] : memref<2x8x128xf32, #tpu.memory_space<vmem>>, vector<1x8x128xf32>
    %7 = vector.shape_cast %6 : vector<1x8x128xf32> to vector<8x128xf32>
    %8 = vector.extract_strided_slice %3 {offsets = [0, 0], sizes = [32, 96], strides = [1, 1]} : vector<32x256xbf16> to vector<32x96xbf16>
    %9 = vector.extract_strided_slice %3 {offsets = [0, 96], sizes = [32, 32], strides = [1, 1]} : vector<32x256xbf16> to vector<32x32xbf16>
    %10 = vector.extract_strided_slice %3 {offsets = [0, 128], sizes = [32, 128], strides = [1, 1]} : vector<32x256xbf16> to vector<32x128xbf16>
    %11 = vector.extract_strided_slice %7 {offsets = [0, 0], sizes = [1, 96], strides = [1, 1]} : vector<8x128xf32> to vector<1x96xf32>
    %12 = vector.extract_strided_slice %7 {offsets = [1, 0], sizes = [1, 32], strides = [1, 1]} : vector<8x128xf32> to vector<1x32xf32>
    %13 = vector.extract_strided_slice %7 {offsets = [2, 0], sizes = [1, 128], strides = [1, 1]} : vector<8x128xf32> to vector<1x128xf32>
    %14 = vector.extract_strided_slice %7 {offsets = [3, 0], sizes = [1, 32], strides = [1, 1]} : vector<8x128xf32> to vector<1x32xf32>
    %15 = vector.extract_strided_slice %7 {offsets = [4, 0], sizes = [1, 32], strides = [1, 1]} : vector<8x128xf32> to vector<1x32xf32>
    %16 = vector.extract_strided_slice %7 {offsets = [5, 0], sizes = [1, 32], strides = [1, 1]} : vector<8x128xf32> to vector<1x32xf32>
    %17 = vector.extract_strided_slice %7 {offsets = [6, 0], sizes = [1, 32], strides = [1, 1]} : vector<8x128xf32> to vector<1x32xf32>
    %18 = vector.extract_strided_slice %7 {offsets = [7, 0], sizes = [1, 32], strides = [1, 1]} : vector<8x128xf32> to vector<1x32xf32>
    %19 = arith.truncf %1 : vector<16x32xf32> to vector<16x32xbf16>
    %cst = arith.constant dense<0.000000e+00> : vector<16x96xf32>
    %20 = tpu.matmul %19, %8, %cst {dimension_numbers = #tpu.dot_dimension_numbers<[1], [0], [0], [1], [0, 0, 1, 1], [], []>} : vector<16x32xbf16>, vector<32x96xbf16>, vector<16x96xf32> -> vector<16x96xf32>
    %21 = vector.broadcast %11 : vector<1x96xf32> to vector<16x96xf32>
    %22 = arith.addf %20, %21 : vector<16x96xf32>
    %23 = vector.extract_strided_slice %22 {offsets = [0, 0], sizes = [16, 32], strides = [1, 1]} : vector<16x96xf32> to vector<16x32xf32>
    %24 = vector.shape_cast %23 : vector<16x32xf32> to vector<2x8x32xf32>
    %25 = arith.truncf %24 : vector<2x8x32xf32> to vector<2x8x32xbf16>
    %26 = vector.extract_strided_slice %22 {offsets = [0, 32], sizes = [16, 32], strides = [1, 1]} : vector<16x96xf32> to vector<16x32xf32>
    %27 = vector.shape_cast %26 : vector<16x32xf32> to vector<2x8x32xf32>
    %28 = arith.truncf %27 : vector<2x8x32xf32> to vector<2x8x32xbf16>
    %29 = vector.extract_strided_slice %22 {offsets = [0, 64], sizes = [16, 32], strides = [1, 1]} : vector<16x96xf32> to vector<16x32xf32>
    %30 = vector.shape_cast %29 : vector<16x32xf32> to vector<2x8x32xf32>
    %31 = arith.truncf %30 : vector<2x8x32xf32> to vector<2x8x32xbf16>
    %32 = vector.extract_strided_slice %25 {offsets = [0, 0, 0], sizes = [2, 8, 8], strides = [1, 1, 1]} : vector<2x8x32xbf16> to vector<2x8x8xbf16>
    %33 = vector.extract_strided_slice %28 {offsets = [0, 0, 0], sizes = [2, 8, 8], strides = [1, 1, 1]} : vector<2x8x32xbf16> to vector<2x8x8xbf16>
    "tpu.trace_start"() <{level = 10 : i32, message = "bqd,bkd->bqk"}> : () -> ()
    %cst_11 = arith.constant dense<0.000000e+00> : vector<2x8x8xf32>
    %34 = tpu.matmul %32, %33, %cst_11 {dimension_numbers = #tpu.dot_dimension_numbers<[2], [2], [1], [1], [0, 0, 0, 1, 1, 1], [0], [0]>} : vector<2x8x8xbf16>, vector<2x8x8xbf16>, vector<2x8x8xf32> -> vector<2x8x8xf32>
    "tpu.trace_stop"() : () -> ()
    %cst_12 = arith.constant dense<0xFF800000> : vector<2x8xf32>
    %35 = vector.multi_reduction <maximumf>, %34, %cst_12 [2] : vector<2x8x8xf32> to vector<2x8xf32>
    %36 = vector.shape_cast %35 : vector<2x8xf32> to vector<2x8x1xf32>
    %37 = vector.broadcast %36 : vector<2x8x1xf32> to vector<2x8x8xf32>
    %38 = arith.subf %34, %37 : vector<2x8x8xf32>
    %39 = math.exp %38 : vector<2x8x8xf32>
    %cst_13 = arith.constant dense<0.000000e+00> : vector<2x8xf32>
    %40 = vector.multi_reduction <add>, %39, %cst_13 [2] : vector<2x8x8xf32> to vector<2x8xf32>
    %41 = vector.shape_cast %40 : vector<2x8xf32> to vector<2x8x1xf32>
    %42 = tpu.reciprocal %41 {approx = true} : vector<2x8x1xf32> -> vector<2x8x1xf32>
    %43 = vector.broadcast %42 : vector<2x8x1xf32> to vector<2x8x8xf32>
    %44 = arith.mulf %39, %43 : vector<2x8x8xf32>
    %45 = arith.truncf %44 : vector<2x8x8xf32> to vector<2x8x8xbf16>
    %46 = vector.extract_strided_slice %31 {offsets = [0, 0, 0], sizes = [2, 8, 8], strides = [1, 1, 1]} : vector<2x8x32xbf16> to vector<2x8x8xbf16>
    "tpu.trace_start"() <{level = 10 : i32, message = "bqk,bkd->bqd"}> : () -> ()
    %cst_14 = arith.constant dense<0.000000e+00> : vector<2x8x8xf32>
    %47 = tpu.matmul %45, %46, %cst_14 {dimension_numbers = #tpu.dot_dimension_numbers<[2], [1], [1], [2], [0, 0, 0, 1, 1, 2], [0], [0]>} : vector<2x8x8xbf16>, vector<2x8x8xbf16>, vector<2x8x8xf32> -> vector<2x8x8xf32>
    "tpu.trace_stop"() : () -> ()
    %48 = vector.extract_strided_slice %25 {offsets = [0, 0, 8], sizes = [2, 8, 8], strides = [1, 1, 1]} : vector<2x8x32xbf16> to vector<2x8x8xbf16>
    %49 = vector.extract_strided_slice %28 {offsets = [0, 0, 8], sizes = [2, 8, 8], strides = [1, 1, 1]} : vector<2x8x32xbf16> to vector<2x8x8xbf16>
    "tpu.trace_start"() <{level = 10 : i32, message = "bqd,bkd->bqk"}> : () -> ()
    %cst_15 = arith.constant dense<0.000000e+00> : vector<2x8x8xf32>
    %50 = tpu.matmul %48, %49, %cst_15 {dimension_numbers = #tpu.dot_dimension_numbers<[2], [2], [1], [1], [0, 0, 0, 1, 1, 1], [0], [0]>} : vector<2x8x8xbf16>, vector<2x8x8xbf16>, vector<2x8x8xf32> -> vector<2x8x8xf32>
    "tpu.trace_stop"() : () -> ()
    %cst_16 = arith.constant dense<0xFF800000> : vector<2x8xf32>
    %51 = vector.multi_reduction <maximumf>, %50, %cst_16 [2] : vector<2x8x8xf32> to vector<2x8xf32>
    %52 = vector.shape_cast %51 : vector<2x8xf32> to vector<2x8x1xf32>
    %53 = vector.broadcast %52 : vector<2x8x1xf32> to vector<2x8x8xf32>
    %54 = arith.subf %50, %53 : vector<2x8x8xf32>
    %55 = math.exp %54 : vector<2x8x8xf32>
    %cst_17 = arith.constant dense<0.000000e+00> : vector<2x8xf32>
    %56 = vector.multi_reduction <add>, %55, %cst_17 [2] : vector<2x8x8xf32> to vector<2x8xf32>
    %57 = vector.shape_cast %56 : vector<2x8xf32> to vector<2x8x1xf32>
    %58 = tpu.reciprocal %57 {approx = true} : vector<2x8x1xf32> -> vector<2x8x1xf32>
    %59 = vector.broadcast %58 : vector<2x8x1xf32> to vector<2x8x8xf32>
    %60 = arith.mulf %55, %59 : vector<2x8x8xf32>
    %61 = arith.truncf %60 : vector<2x8x8xf32> to vector<2x8x8xbf16>
    %62 = vector.extract_strided_slice %31 {offsets = [0, 0, 8], sizes = [2, 8, 8], strides = [1, 1, 1]} : vector<2x8x32xbf16> to vector<2x8x8xbf16>
    "tpu.trace_start"() <{level = 10 : i32, message = "bqk,bkd->bqd"}> : () -> ()
    %cst_18 = arith.constant dense<0.000000e+00> : vector<2x8x8xf32>
    %63 = tpu.matmul %61, %62, %cst_18 {dimension_numbers = #tpu.dot_dimension_numbers<[2], [1], [1], [2], [0, 0, 0, 1, 1, 2], [0], [0]>} : vector<2x8x8xbf16>, vector<2x8x8xbf16>, vector<2x8x8xf32> -> vector<2x8x8xf32>
    "tpu.trace_stop"() : () -> ()
    %64 = vector.extract_strided_slice %25 {offsets = [0, 0, 16], sizes = [2, 8, 8], strides = [1, 1, 1]} : vector<2x8x32xbf16> to vector<2x8x8xbf16>
    %65 = vector.extract_strided_slice %28 {offsets = [0, 0, 16], sizes = [2, 8, 8], strides = [1, 1, 1]} : vector<2x8x32xbf16> to vector<2x8x8xbf16>
    "tpu.trace_start"() <{level = 10 : i32, message = "bqd,bkd->bqk"}> : () -> ()
    %cst_19 = arith.constant dense<0.000000e+00> : vector<2x8x8xf32>
    %66 = tpu.matmul %64, %65, %cst_19 {dimension_numbers = #tpu.dot_dimension_numbers<[2], [2], [1], [1], [0, 0, 0, 1, 1, 1], [0], [0]>} : vector<2x8x8xbf16>, vector<2x8x8xbf16>, vector<2x8x8xf32> -> vector<2x8x8xf32>
    "tpu.trace_stop"() : () -> ()
    %cst_20 = arith.constant dense<0xFF800000> : vector<2x8xf32>
    %67 = vector.multi_reduction <maximumf>, %66, %cst_20 [2] : vector<2x8x8xf32> to vector<2x8xf32>
    %68 = vector.shape_cast %67 : vector<2x8xf32> to vector<2x8x1xf32>
    %69 = vector.broadcast %68 : vector<2x8x1xf32> to vector<2x8x8xf32>
    %70 = arith.subf %66, %69 : vector<2x8x8xf32>
    %71 = math.exp %70 : vector<2x8x8xf32>
    %cst_21 = arith.constant dense<0.000000e+00> : vector<2x8xf32>
    %72 = vector.multi_reduction <add>, %71, %cst_21 [2] : vector<2x8x8xf32> to vector<2x8xf32>
    %73 = vector.shape_cast %72 : vector<2x8xf32> to vector<2x8x1xf32>
    %74 = tpu.reciprocal %73 {approx = true} : vector<2x8x1xf32> -> vector<2x8x1xf32>
    %75 = vector.broadcast %74 : vector<2x8x1xf32> to vector<2x8x8xf32>
    %76 = arith.mulf %71, %75 : vector<2x8x8xf32>
    %77 = arith.truncf %76 : vector<2x8x8xf32> to vector<2x8x8xbf16>
    %78 = vector.extract_strided_slice %31 {offsets = [0, 0, 16], sizes = [2, 8, 8], strides = [1, 1, 1]} : vector<2x8x32xbf16> to vector<2x8x8xbf16>
    "tpu.trace_start"() <{level = 10 : i32, message = "bqk,bkd->bqd"}> : () -> ()
    %cst_22 = arith.constant dense<0.000000e+00> : vector<2x8x8xf32>
    %79 = tpu.matmul %77, %78, %cst_22 {dimension_numbers = #tpu.dot_dimension_numbers<[2], [1], [1], [2], [0, 0, 0, 1, 1, 2], [0], [0]>} : vector<2x8x8xbf16>, vector<2x8x8xbf16>, vector<2x8x8xf32> -> vector<2x8x8xf32>
    "tpu.trace_stop"() : () -> ()
    %80 = vector.extract_strided_slice %25 {offsets = [0, 0, 24], sizes = [2, 8, 8], strides = [1, 1, 1]} : vector<2x8x32xbf16> to vector<2x8x8xbf16>
    %81 = vector.extract_strided_slice %28 {offsets = [0, 0, 24], sizes = [2, 8, 8], strides = [1, 1, 1]} : vector<2x8x32xbf16> to vector<2x8x8xbf16>
    "tpu.trace_start"() <{level = 10 : i32, message = "bqd,bkd->bqk"}> : () -> ()
    %cst_23 = arith.constant dense<0.000000e+00> : vector<2x8x8xf32>
    %82 = tpu.matmul %80, %81, %cst_23 {dimension_numbers = #tpu.dot_dimension_numbers<[2], [2], [1], [1], [0, 0, 0, 1, 1, 1], [0], [0]>} : vector<2x8x8xbf16>, vector<2x8x8xbf16>, vector<2x8x8xf32> -> vector<2x8x8xf32>
    "tpu.trace_stop"() : () -> ()
    %cst_24 = arith.constant dense<0xFF800000> : vector<2x8xf32>
    %83 = vector.multi_reduction <maximumf>, %82, %cst_24 [2] : vector<2x8x8xf32> to vector<2x8xf32>
    %84 = vector.shape_cast %83 : vector<2x8xf32> to vector<2x8x1xf32>
    %85 = vector.broadcast %84 : vector<2x8x1xf32> to vector<2x8x8xf32>
    %86 = arith.subf %82, %85 : vector<2x8x8xf32>
    %87 = math.exp %86 : vector<2x8x8xf32>
    %cst_25 = arith.constant dense<0.000000e+00> : vector<2x8xf32>
    %88 = vector.multi_reduction <add>, %87, %cst_25 [2] : vector<2x8x8xf32> to vector<2x8xf32>
    %89 = vector.shape_cast %88 : vector<2x8xf32> to vector<2x8x1xf32>
    %90 = tpu.reciprocal %89 {approx = true} : vector<2x8x1xf32> -> vector<2x8x1xf32>
    %91 = vector.broadcast %90 : vector<2x8x1xf32> to vector<2x8x8xf32>
    %92 = arith.mulf %87, %91 : vector<2x8x8xf32>
    %93 = arith.truncf %92 : vector<2x8x8xf32> to vector<2x8x8xbf16>
    %94 = vector.extract_strided_slice %31 {offsets = [0, 0, 24], sizes = [2, 8, 8], strides = [1, 1, 1]} : vector<2x8x32xbf16> to vector<2x8x8xbf16>
    "tpu.trace_start"() <{level = 10 : i32, message = "bqk,bkd->bqd"}> : () -> ()
    %cst_26 = arith.constant dense<0.000000e+00> : vector<2x8x8xf32>
    %95 = tpu.matmul %93, %94, %cst_26 {dimension_numbers = #tpu.dot_dimension_numbers<[2], [1], [1], [2], [0, 0, 0, 1, 1, 2], [0], [0]>} : vector<2x8x8xbf16>, vector<2x8x8xbf16>, vector<2x8x8xf32> -> vector<2x8x8xf32>
    "tpu.trace_stop"() : () -> ()
    %96 = tpu.concatenate %47, %63, %79, %95 in 2 : vector<2x8x8xf32>, vector<2x8x8xf32>, vector<2x8x8xf32>, vector<2x8x8xf32> -> vector<2x8x32xf32>
    %97 = vector.shape_cast %96 : vector<2x8x32xf32> to vector<16x32xf32>
    %98 = arith.truncf %97 : vector<16x32xf32> to vector<16x32xbf16>
    %cst_27 = arith.constant dense<0.000000e+00> : vector<16x32xf32>
    %99 = tpu.matmul %98, %9, %cst_27 {dimension_numbers = #tpu.dot_dimension_numbers<[1], [0], [0], [1], [0, 0, 1, 1], [], []>} : vector<16x32xbf16>, vector<32x32xbf16>, vector<16x32xf32> -> vector<16x32xf32>
    %100 = vector.broadcast %12 : vector<1x32xf32> to vector<16x32xf32>
    %101 = arith.addf %99, %100 : vector<16x32xf32>
    %102 = arith.addf %1, %101 : vector<16x32xf32>
    %cst_28 = arith.constant dense<0.000000e+00> : vector<16xf32>
    %103 = vector.multi_reduction <add>, %102, %cst_28 [1] : vector<16x32xf32> to vector<16xf32>
    %104 = vector.shape_cast %103 : vector<16xf32> to vector<16x1xf32>
    %cst_29 = arith.constant 3.200000e+01 : f32
    %105 = vector.broadcast %cst_29 : f32 to vector<16x1xf32>
    %106 = arith.divf %104, %105 : vector<16x1xf32>
    %107 = vector.broadcast %106 : vector<16x1xf32> to vector<16x32xf32>
    %108 = arith.subf %102, %107 : vector<16x32xf32>
    %109 = arith.mulf %108, %108 : vector<16x32xf32>
    %cst_30 = arith.constant dense<0.000000e+00> : vector<16xf32>
    %110 = vector.multi_reduction <add>, %109, %cst_30 [1] : vector<16x32xf32> to vector<16xf32>
    %111 = vector.shape_cast %110 : vector<16xf32> to vector<16x1xf32>
    %cst_31 = arith.constant 3.200000e+01 : f32
    %112 = vector.broadcast %cst_31 : f32 to vector<16x1xf32>
    %113 = arith.divf %111, %112 : vector<16x1xf32>
    %114 = vector.broadcast %106 : vector<16x1xf32> to vector<16x32xf32>
    %115 = arith.subf %102, %114 : vector<16x32xf32>
    %cst_32 = arith.constant 9.99999974E-6 : f32
    %116 = vector.broadcast %cst_32 : f32 to vector<16x1xf32>
    %117 = arith.addf %113, %116 : vector<16x1xf32>
    %118 = math.rsqrt %117 : vector<16x1xf32>
    %119 = vector.broadcast %118 : vector<16x1xf32> to vector<16x32xf32>
    %120 = arith.mulf %115, %119 : vector<16x32xf32>
    %121 = vector.broadcast %15 : vector<1x32xf32> to vector<16x32xf32>
    %122 = arith.mulf %120, %121 : vector<16x32xf32>
    %123 = vector.broadcast %16 : vector<1x32xf32> to vector<16x32xf32>
    %124 = arith.addf %122, %123 : vector<16x32xf32>
    %125 = arith.truncf %124 : vector<16x32xf32> to vector<16x32xbf16>
    %cst_33 = arith.constant dense<0.000000e+00> : vector<16x128xf32>
    %126 = tpu.matmul %125, %10, %cst_33 {dimension_numbers = #tpu.dot_dimension_numbers<[1], [0], [0], [1], [0, 0, 1, 1], [], []>} : vector<16x32xbf16>, vector<32x128xbf16>, vector<16x128xf32> -> vector<16x128xf32>
    %127 = vector.broadcast %13 : vector<1x128xf32> to vector<16x128xf32>
    %128 = arith.addf %126, %127 : vector<16x128xf32>
    %cst_34 = arith.constant 0.000000e+00 : f32
    %129 = vector.broadcast %cst_34 : f32 to vector<16x128xf32>
    %130 = arith.maximumf %128, %129 : vector<16x128xf32>
    %131 = arith.truncf %130 : vector<16x128xf32> to vector<16x128xbf16>
    %cst_35 = arith.constant dense<0.000000e+00> : vector<16x32xf32>
    %132 = tpu.matmul %131, %5, %cst_35 {dimension_numbers = #tpu.dot_dimension_numbers<[1], [0], [0], [1], [0, 0, 1, 1], [], []>} : vector<16x128xbf16>, vector<128x32xbf16>, vector<16x32xf32> -> vector<16x32xf32>
    %133 = vector.broadcast %14 : vector<1x32xf32> to vector<16x32xf32>
    %134 = arith.addf %132, %133 : vector<16x32xf32>
    %135 = arith.addf %124, %134 : vector<16x32xf32>
    %cst_36 = arith.constant dense<0.000000e+00> : vector<16xf32>
    %136 = vector.multi_reduction <add>, %135, %cst_36 [1] : vector<16x32xf32> to vector<16xf32>
    %137 = vector.shape_cast %136 : vector<16xf32> to vector<16x1xf32>
    %cst_37 = arith.constant 3.200000e+01 : f32
    %138 = vector.broadcast %cst_37 : f32 to vector<16x1xf32>
    %139 = arith.divf %137, %138 : vector<16x1xf32>
    %140 = vector.broadcast %139 : vector<16x1xf32> to vector<16x32xf32>
    %141 = arith.subf %135, %140 : vector<16x32xf32>
    %142 = arith.mulf %141, %141 : vector<16x32xf32>
    %cst_38 = arith.constant dense<0.000000e+00> : vector<16xf32>
    %143 = vector.multi_reduction <add>, %142, %cst_38 [1] : vector<16x32xf32> to vector<16xf32>
    %144 = vector.shape_cast %143 : vector<16xf32> to vector<16x1xf32>
    %cst_39 = arith.constant 3.200000e+01 : f32
    %145 = vector.broadcast %cst_39 : f32 to vector<16x1xf32>
    %146 = arith.divf %144, %145 : vector<16x1xf32>
    %147 = vector.broadcast %139 : vector<16x1xf32> to vector<16x32xf32>
    %148 = arith.subf %135, %147 : vector<16x32xf32>
    %cst_40 = arith.constant 9.99999974E-6 : f32
    %149 = vector.broadcast %cst_40 : f32 to vector<16x1xf32>
    %150 = arith.addf %146, %149 : vector<16x1xf32>
    %151 = math.rsqrt %150 : vector<16x1xf32>
    %152 = vector.broadcast %151 : vector<16x1xf32> to vector<16x32xf32>
    %153 = arith.mulf %148, %152 : vector<16x32xf32>
    %154 = vector.broadcast %17 : vector<1x32xf32> to vector<16x32xf32>
    %155 = arith.mulf %153, %154 : vector<16x32xf32>
    %156 = vector.broadcast %18 : vector<1x32xf32> to vector<16x32xf32>
    %157 = arith.addf %155, %156 : vector<16x32xf32>
    %c1 = arith.constant 1 : index
    %c0_41 = arith.constant 0 : index
    %c0_42 = arith.constant 0 : index
    %158 = vector.load %arg1[%c1, %c0_41, %c0_42] : memref<2x32x256xbf16, #tpu.memory_space<vmem>>, vector<1x32x256xbf16>
    %159 = vector.shape_cast %158 : vector<1x32x256xbf16> to vector<32x256xbf16>
    %c1_43 = arith.constant 1 : index
    %c0_44 = arith.constant 0 : index
    %c0_45 = arith.constant 0 : index
    %160 = vector.load %arg2[%c1_43, %c0_44, %c0_45] : memref<2x128x32xbf16, #tpu.memory_space<vmem>>, vector<1x128x32xbf16>
    %161 = vector.shape_cast %160 : vector<1x128x32xbf16> to vector<128x32xbf16>
    %c1_46 = arith.constant 1 : index
    %c0_47 = arith.constant 0 : index
    %c0_48 = arith.constant 0 : index
    %162 = vector.load %arg3[%c1_46, %c0_47, %c0_48] : memref<2x8x128xf32, #tpu.memory_space<vmem>>, vector<1x8x128xf32>
    %163 = vector.shape_cast %162 : vector<1x8x128xf32> to vector<8x128xf32>
    %164 = vector.extract_strided_slice %159 {offsets = [0, 0], sizes = [32, 96], strides = [1, 1]} : vector<32x256xbf16> to vector<32x96xbf16>
    %165 = vector.extract_strided_slice %159 {offsets = [0, 96], sizes = [32, 32], strides = [1, 1]} : vector<32x256xbf16> to vector<32x32xbf16>
    %166 = vector.extract_strided_slice %159 {offsets = [0, 128], sizes = [32, 128], strides = [1, 1]} : vector<32x256xbf16> to vector<32x128xbf16>
    %167 = vector.extract_strided_slice %163 {offsets = [0, 0], sizes = [1, 96], strides = [1, 1]} : vector<8x128xf32> to vector<1x96xf32>
    %168 = vector.extract_strided_slice %163 {offsets = [1, 0], sizes = [1, 32], strides = [1, 1]} : vector<8x128xf32> to vector<1x32xf32>
    %169 = vector.extract_strided_slice %163 {offsets = [2, 0], sizes = [1, 128], strides = [1, 1]} : vector<8x128xf32> to vector<1x128xf32>
    %170 = vector.extract_strided_slice %163 {offsets = [3, 0], sizes = [1, 32], strides = [1, 1]} : vector<8x128xf32> to vector<1x32xf32>
    %171 = vector.extract_strided_slice %163 {offsets = [4, 0], sizes = [1, 32], strides = [1, 1]} : vector<8x128xf32> to vector<1x32xf32>
    %172 = vector.extract_strided_slice %163 {offsets = [5, 0], sizes = [1, 32], strides = [1, 1]} : vector<8x128xf32> to vector<1x32xf32>
    %173 = vector.extract_strided_slice %163 {offsets = [6, 0], sizes = [1, 32], strides = [1, 1]} : vector<8x128xf32> to vector<1x32xf32>
    %174 = vector.extract_strided_slice %163 {offsets = [7, 0], sizes = [1, 32], strides = [1, 1]} : vector<8x128xf32> to vector<1x32xf32>
    %175 = arith.truncf %157 : vector<16x32xf32> to vector<16x32xbf16>
    %cst_49 = arith.constant dense<0.000000e+00> : vector<16x96xf32>
    %176 = tpu.matmul %175, %164, %cst_49 {dimension_numbers = #tpu.dot_dimension_numbers<[1], [0], [0], [1], [0, 0, 1, 1], [], []>} : vector<16x32xbf16>, vector<32x96xbf16>, vector<16x96xf32> -> vector<16x96xf32>
    %177 = vector.broadcast %167 : vector<1x96xf32> to vector<16x96xf32>
    %178 = arith.addf %176, %177 : vector<16x96xf32>
    %179 = vector.extract_strided_slice %178 {offsets = [0, 0], sizes = [16, 32], strides = [1, 1]} : vector<16x96xf32> to vector<16x32xf32>
    %180 = vector.shape_cast %179 : vector<16x32xf32> to vector<2x8x32xf32>
    %181 = arith.truncf %180 : vector<2x8x32xf32> to vector<2x8x32xbf16>
    %182 = vector.extract_strided_slice %178 {offsets = [0, 32], sizes = [16, 32], strides = [1, 1]} : vector<16x96xf32> to vector<16x32xf32>
    %183 = vector.shape_cast %182 : vector<16x32xf32> to vector<2x8x32xf32>
    %184 = arith.truncf %183 : vector<2x8x32xf32> to vector<2x8x32xbf16>
    %185 = vector.extract_strided_slice %178 {offsets = [0, 64], sizes = [16, 32], strides = [1, 1]} : vector<16x96xf32> to vector<16x32xf32>
    %186 = vector.shape_cast %185 : vector<16x32xf32> to vector<2x8x32xf32>
    %187 = arith.truncf %186 : vector<2x8x32xf32> to vector<2x8x32xbf16>
    %188 = vector.extract_strided_slice %181 {offsets = [0, 0, 0], sizes = [2, 8, 8], strides = [1, 1, 1]} : vector<2x8x32xbf16> to vector<2x8x8xbf16>
    %189 = vector.extract_strided_slice %184 {offsets = [0, 0, 0], sizes = [2, 8, 8], strides = [1, 1, 1]} : vector<2x8x32xbf16> to vector<2x8x8xbf16>
    "tpu.trace_start"() <{level = 10 : i32, message = "bqd,bkd->bqk"}> : () -> ()
    %cst_50 = arith.constant dense<0.000000e+00> : vector<2x8x8xf32>
    %190 = tpu.matmul %188, %189, %cst_50 {dimension_numbers = #tpu.dot_dimension_numbers<[2], [2], [1], [1], [0, 0, 0, 1, 1, 1], [0], [0]>} : vector<2x8x8xbf16>, vector<2x8x8xbf16>, vector<2x8x8xf32> -> vector<2x8x8xf32>
    "tpu.trace_stop"() : () -> ()
    %cst_51 = arith.constant dense<0xFF800000> : vector<2x8xf32>
    %191 = vector.multi_reduction <maximumf>, %190, %cst_51 [2] : vector<2x8x8xf32> to vector<2x8xf32>
    %192 = vector.shape_cast %191 : vector<2x8xf32> to vector<2x8x1xf32>
    %193 = vector.broadcast %192 : vector<2x8x1xf32> to vector<2x8x8xf32>
    %194 = arith.subf %190, %193 : vector<2x8x8xf32>
    %195 = math.exp %194 : vector<2x8x8xf32>
    %cst_52 = arith.constant dense<0.000000e+00> : vector<2x8xf32>
    %196 = vector.multi_reduction <add>, %195, %cst_52 [2] : vector<2x8x8xf32> to vector<2x8xf32>
    %197 = vector.shape_cast %196 : vector<2x8xf32> to vector<2x8x1xf32>
    %198 = tpu.reciprocal %197 {approx = true} : vector<2x8x1xf32> -> vector<2x8x1xf32>
    %199 = vector.broadcast %198 : vector<2x8x1xf32> to vector<2x8x8xf32>
    %200 = arith.mulf %195, %199 : vector<2x8x8xf32>
    %201 = arith.truncf %200 : vector<2x8x8xf32> to vector<2x8x8xbf16>
    %202 = vector.extract_strided_slice %187 {offsets = [0, 0, 0], sizes = [2, 8, 8], strides = [1, 1, 1]} : vector<2x8x32xbf16> to vector<2x8x8xbf16>
    "tpu.trace_start"() <{level = 10 : i32, message = "bqk,bkd->bqd"}> : () -> ()
    %cst_53 = arith.constant dense<0.000000e+00> : vector<2x8x8xf32>
    %203 = tpu.matmul %201, %202, %cst_53 {dimension_numbers = #tpu.dot_dimension_numbers<[2], [1], [1], [2], [0, 0, 0, 1, 1, 2], [0], [0]>} : vector<2x8x8xbf16>, vector<2x8x8xbf16>, vector<2x8x8xf32> -> vector<2x8x8xf32>
    "tpu.trace_stop"() : () -> ()
    %204 = vector.extract_strided_slice %181 {offsets = [0, 0, 8], sizes = [2, 8, 8], strides = [1, 1, 1]} : vector<2x8x32xbf16> to vector<2x8x8xbf16>
    %205 = vector.extract_strided_slice %184 {offsets = [0, 0, 8], sizes = [2, 8, 8], strides = [1, 1, 1]} : vector<2x8x32xbf16> to vector<2x8x8xbf16>
    "tpu.trace_start"() <{level = 10 : i32, message = "bqd,bkd->bqk"}> : () -> ()
    %cst_54 = arith.constant dense<0.000000e+00> : vector<2x8x8xf32>
    %206 = tpu.matmul %204, %205, %cst_54 {dimension_numbers = #tpu.dot_dimension_numbers<[2], [2], [1], [1], [0, 0, 0, 1, 1, 1], [0], [0]>} : vector<2x8x8xbf16>, vector<2x8x8xbf16>, vector<2x8x8xf32> -> vector<2x8x8xf32>
    "tpu.trace_stop"() : () -> ()
    %cst_55 = arith.constant dense<0xFF800000> : vector<2x8xf32>
    %207 = vector.multi_reduction <maximumf>, %206, %cst_55 [2] : vector<2x8x8xf32> to vector<2x8xf32>
    %208 = vector.shape_cast %207 : vector<2x8xf32> to vector<2x8x1xf32>
    %209 = vector.broadcast %208 : vector<2x8x1xf32> to vector<2x8x8xf32>
    %210 = arith.subf %206, %209 : vector<2x8x8xf32>
    %211 = math.exp %210 : vector<2x8x8xf32>
    %cst_56 = arith.constant dense<0.000000e+00> : vector<2x8xf32>
    %212 = vector.multi_reduction <add>, %211, %cst_56 [2] : vector<2x8x8xf32> to vector<2x8xf32>
    %213 = vector.shape_cast %212 : vector<2x8xf32> to vector<2x8x1xf32>
    %214 = tpu.reciprocal %213 {approx = true} : vector<2x8x1xf32> -> vector<2x8x1xf32>
    %215 = vector.broadcast %214 : vector<2x8x1xf32> to vector<2x8x8xf32>
    %216 = arith.mulf %211, %215 : vector<2x8x8xf32>
    %217 = arith.truncf %216 : vector<2x8x8xf32> to vector<2x8x8xbf16>
    %218 = vector.extract_strided_slice %187 {offsets = [0, 0, 8], sizes = [2, 8, 8], strides = [1, 1, 1]} : vector<2x8x32xbf16> to vector<2x8x8xbf16>
    "tpu.trace_start"() <{level = 10 : i32, message = "bqk,bkd->bqd"}> : () -> ()
    %cst_57 = arith.constant dense<0.000000e+00> : vector<2x8x8xf32>
    %219 = tpu.matmul %217, %218, %cst_57 {dimension_numbers = #tpu.dot_dimension_numbers<[2], [1], [1], [2], [0, 0, 0, 1, 1, 2], [0], [0]>} : vector<2x8x8xbf16>, vector<2x8x8xbf16>, vector<2x8x8xf32> -> vector<2x8x8xf32>
    "tpu.trace_stop"() : () -> ()
    %220 = vector.extract_strided_slice %181 {offsets = [0, 0, 16], sizes = [2, 8, 8], strides = [1, 1, 1]} : vector<2x8x32xbf16> to vector<2x8x8xbf16>
    %221 = vector.extract_strided_slice %184 {offsets = [0, 0, 16], sizes = [2, 8, 8], strides = [1, 1, 1]} : vector<2x8x32xbf16> to vector<2x8x8xbf16>
    "tpu.trace_start"() <{level = 10 : i32, message = "bqd,bkd->bqk"}> : () -> ()
    %cst_58 = arith.constant dense<0.000000e+00> : vector<2x8x8xf32>
    %222 = tpu.matmul %220, %221, %cst_58 {dimension_numbers = #tpu.dot_dimension_numbers<[2], [2], [1], [1], [0, 0, 0, 1, 1, 1], [0], [0]>} : vector<2x8x8xbf16>, vector<2x8x8xbf16>, vector<2x8x8xf32> -> vector<2x8x8xf32>
    "tpu.trace_stop"() : () -> ()
    %cst_59 = arith.constant dense<0xFF800000> : vector<2x8xf32>
    %223 = vector.multi_reduction <maximumf>, %222, %cst_59 [2] : vector<2x8x8xf32> to vector<2x8xf32>
    %224 = vector.shape_cast %223 : vector<2x8xf32> to vector<2x8x1xf32>
    %225 = vector.broadcast %224 : vector<2x8x1xf32> to vector<2x8x8xf32>
    %226 = arith.subf %222, %225 : vector<2x8x8xf32>
    %227 = math.exp %226 : vector<2x8x8xf32>
    %cst_60 = arith.constant dense<0.000000e+00> : vector<2x8xf32>
    %228 = vector.multi_reduction <add>, %227, %cst_60 [2] : vector<2x8x8xf32> to vector<2x8xf32>
    %229 = vector.shape_cast %228 : vector<2x8xf32> to vector<2x8x1xf32>
    %230 = tpu.reciprocal %229 {approx = true} : vector<2x8x1xf32> -> vector<2x8x1xf32>
    %231 = vector.broadcast %230 : vector<2x8x1xf32> to vector<2x8x8xf32>
    %232 = arith.mulf %227, %231 : vector<2x8x8xf32>
    %233 = arith.truncf %232 : vector<2x8x8xf32> to vector<2x8x8xbf16>
    %234 = vector.extract_strided_slice %187 {offsets = [0, 0, 16], sizes = [2, 8, 8], strides = [1, 1, 1]} : vector<2x8x32xbf16> to vector<2x8x8xbf16>
    "tpu.trace_start"() <{level = 10 : i32, message = "bqk,bkd->bqd"}> : () -> ()
    %cst_61 = arith.constant dense<0.000000e+00> : vector<2x8x8xf32>
    %235 = tpu.matmul %233, %234, %cst_61 {dimension_numbers = #tpu.dot_dimension_numbers<[2], [1], [1], [2], [0, 0, 0, 1, 1, 2], [0], [0]>} : vector<2x8x8xbf16>, vector<2x8x8xbf16>, vector<2x8x8xf32> -> vector<2x8x8xf32>
    "tpu.trace_stop"() : () -> ()
    %236 = vector.extract_strided_slice %181 {offsets = [0, 0, 24], sizes = [2, 8, 8], strides = [1, 1, 1]} : vector<2x8x32xbf16> to vector<2x8x8xbf16>
    %237 = vector.extract_strided_slice %184 {offsets = [0, 0, 24], sizes = [2, 8, 8], strides = [1, 1, 1]} : vector<2x8x32xbf16> to vector<2x8x8xbf16>
    "tpu.trace_start"() <{level = 10 : i32, message = "bqd,bkd->bqk"}> : () -> ()
    %cst_62 = arith.constant dense<0.000000e+00> : vector<2x8x8xf32>
    %238 = tpu.matmul %236, %237, %cst_62 {dimension_numbers = #tpu.dot_dimension_numbers<[2], [2], [1], [1], [0, 0, 0, 1, 1, 1], [0], [0]>} : vector<2x8x8xbf16>, vector<2x8x8xbf16>, vector<2x8x8xf32> -> vector<2x8x8xf32>
    "tpu.trace_stop"() : () -> ()
    %cst_63 = arith.constant dense<0xFF800000> : vector<2x8xf32>
    %239 = vector.multi_reduction <maximumf>, %238, %cst_63 [2] : vector<2x8x8xf32> to vector<2x8xf32>
    %240 = vector.shape_cast %239 : vector<2x8xf32> to vector<2x8x1xf32>
    %241 = vector.broadcast %240 : vector<2x8x1xf32> to vector<2x8x8xf32>
    %242 = arith.subf %238, %241 : vector<2x8x8xf32>
    %243 = math.exp %242 : vector<2x8x8xf32>
    %cst_64 = arith.constant dense<0.000000e+00> : vector<2x8xf32>
    %244 = vector.multi_reduction <add>, %243, %cst_64 [2] : vector<2x8x8xf32> to vector<2x8xf32>
    %245 = vector.shape_cast %244 : vector<2x8xf32> to vector<2x8x1xf32>
    %246 = tpu.reciprocal %245 {approx = true} : vector<2x8x1xf32> -> vector<2x8x1xf32>
    %247 = vector.broadcast %246 : vector<2x8x1xf32> to vector<2x8x8xf32>
    %248 = arith.mulf %243, %247 : vector<2x8x8xf32>
    %249 = arith.truncf %248 : vector<2x8x8xf32> to vector<2x8x8xbf16>
    %250 = vector.extract_strided_slice %187 {offsets = [0, 0, 24], sizes = [2, 8, 8], strides = [1, 1, 1]} : vector<2x8x32xbf16> to vector<2x8x8xbf16>
    "tpu.trace_start"() <{level = 10 : i32, message = "bqk,bkd->bqd"}> : () -> ()
    %cst_65 = arith.constant dense<0.000000e+00> : vector<2x8x8xf32>
    %251 = tpu.matmul %249, %250, %cst_65 {dimension_numbers = #tpu.dot_dimension_numbers<[2], [1], [1], [2], [0, 0, 0, 1, 1, 2], [0], [0]>} : vector<2x8x8xbf16>, vector<2x8x8xbf16>, vector<2x8x8xf32> -> vector<2x8x8xf32>
    "tpu.trace_stop"() : () -> ()
    %252 = tpu.concatenate %203, %219, %235, %251 in 2 : vector<2x8x8xf32>, vector<2x8x8xf32>, vector<2x8x8xf32>, vector<2x8x8xf32> -> vector<2x8x32xf32>
    %253 = vector.shape_cast %252 : vector<2x8x32xf32> to vector<16x32xf32>
    %254 = arith.truncf %253 : vector<16x32xf32> to vector<16x32xbf16>
    %cst_66 = arith.constant dense<0.000000e+00> : vector<16x32xf32>
    %255 = tpu.matmul %254, %165, %cst_66 {dimension_numbers = #tpu.dot_dimension_numbers<[1], [0], [0], [1], [0, 0, 1, 1], [], []>} : vector<16x32xbf16>, vector<32x32xbf16>, vector<16x32xf32> -> vector<16x32xf32>
    %256 = vector.broadcast %168 : vector<1x32xf32> to vector<16x32xf32>
    %257 = arith.addf %255, %256 : vector<16x32xf32>
    %258 = arith.addf %157, %257 : vector<16x32xf32>
    %cst_67 = arith.constant dense<0.000000e+00> : vector<16xf32>
    %259 = vector.multi_reduction <add>, %258, %cst_67 [1] : vector<16x32xf32> to vector<16xf32>
    %260 = vector.shape_cast %259 : vector<16xf32> to vector<16x1xf32>
    %cst_68 = arith.constant 3.200000e+01 : f32
    %261 = vector.broadcast %cst_68 : f32 to vector<16x1xf32>
    %262 = arith.divf %260, %261 : vector<16x1xf32>
    %263 = vector.broadcast %262 : vector<16x1xf32> to vector<16x32xf32>
    %264 = arith.subf %258, %263 : vector<16x32xf32>
    %265 = arith.mulf %264, %264 : vector<16x32xf32>
    %cst_69 = arith.constant dense<0.000000e+00> : vector<16xf32>
    %266 = vector.multi_reduction <add>, %265, %cst_69 [1] : vector<16x32xf32> to vector<16xf32>
    %267 = vector.shape_cast %266 : vector<16xf32> to vector<16x1xf32>
    %cst_70 = arith.constant 3.200000e+01 : f32
    %268 = vector.broadcast %cst_70 : f32 to vector<16x1xf32>
    %269 = arith.divf %267, %268 : vector<16x1xf32>
    %270 = vector.broadcast %262 : vector<16x1xf32> to vector<16x32xf32>
    %271 = arith.subf %258, %270 : vector<16x32xf32>
    %cst_71 = arith.constant 9.99999974E-6 : f32
    %272 = vector.broadcast %cst_71 : f32 to vector<16x1xf32>
    %273 = arith.addf %269, %272 : vector<16x1xf32>
    %274 = math.rsqrt %273 : vector<16x1xf32>
    %275 = vector.broadcast %274 : vector<16x1xf32> to vector<16x32xf32>
    %276 = arith.mulf %271, %275 : vector<16x32xf32>
    %277 = vector.broadcast %171 : vector<1x32xf32> to vector<16x32xf32>
    %278 = arith.mulf %276, %277 : vector<16x32xf32>
    %279 = vector.broadcast %172 : vector<1x32xf32> to vector<16x32xf32>
    %280 = arith.addf %278, %279 : vector<16x32xf32>
    %281 = arith.truncf %280 : vector<16x32xf32> to vector<16x32xbf16>
    %cst_72 = arith.constant dense<0.000000e+00> : vector<16x128xf32>
    %282 = tpu.matmul %281, %166, %cst_72 {dimension_numbers = #tpu.dot_dimension_numbers<[1], [0], [0], [1], [0, 0, 1, 1], [], []>} : vector<16x32xbf16>, vector<32x128xbf16>, vector<16x128xf32> -> vector<16x128xf32>
    %283 = vector.broadcast %169 : vector<1x128xf32> to vector<16x128xf32>
    %284 = arith.addf %282, %283 : vector<16x128xf32>
    %cst_73 = arith.constant 0.000000e+00 : f32
    %285 = vector.broadcast %cst_73 : f32 to vector<16x128xf32>
    %286 = arith.maximumf %284, %285 : vector<16x128xf32>
    %287 = arith.truncf %286 : vector<16x128xf32> to vector<16x128xbf16>
    %cst_74 = arith.constant dense<0.000000e+00> : vector<16x32xf32>
    %288 = tpu.matmul %287, %161, %cst_74 {dimension_numbers = #tpu.dot_dimension_numbers<[1], [0], [0], [1], [0, 0, 1, 1], [], []>} : vector<16x128xbf16>, vector<128x32xbf16>, vector<16x32xf32> -> vector<16x32xf32>
    %289 = vector.broadcast %170 : vector<1x32xf32> to vector<16x32xf32>
    %290 = arith.addf %288, %289 : vector<16x32xf32>
    %291 = arith.addf %280, %290 : vector<16x32xf32>
    %cst_75 = arith.constant dense<0.000000e+00> : vector<16xf32>
    %292 = vector.multi_reduction <add>, %291, %cst_75 [1] : vector<16x32xf32> to vector<16xf32>
    %293 = vector.shape_cast %292 : vector<16xf32> to vector<16x1xf32>
    %cst_76 = arith.constant 3.200000e+01 : f32
    %294 = vector.broadcast %cst_76 : f32 to vector<16x1xf32>
    %295 = arith.divf %293, %294 : vector<16x1xf32>
    %296 = vector.broadcast %295 : vector<16x1xf32> to vector<16x32xf32>
    %297 = arith.subf %291, %296 : vector<16x32xf32>
    %298 = arith.mulf %297, %297 : vector<16x32xf32>
    %cst_77 = arith.constant dense<0.000000e+00> : vector<16xf32>
    %299 = vector.multi_reduction <add>, %298, %cst_77 [1] : vector<16x32xf32> to vector<16xf32>
    %300 = vector.shape_cast %299 : vector<16xf32> to vector<16x1xf32>
    %cst_78 = arith.constant 3.200000e+01 : f32
    %301 = vector.broadcast %cst_78 : f32 to vector<16x1xf32>
    %302 = arith.divf %300, %301 : vector<16x1xf32>
    %303 = vector.broadcast %295 : vector<16x1xf32> to vector<16x32xf32>
    %304 = arith.subf %291, %303 : vector<16x32xf32>
    %cst_79 = arith.constant 9.99999974E-6 : f32
    %305 = vector.broadcast %cst_79 : f32 to vector<16x1xf32>
    %306 = arith.addf %302, %305 : vector<16x1xf32>
    %307 = math.rsqrt %306 : vector<16x1xf32>
    %308 = vector.broadcast %307 : vector<16x1xf32> to vector<16x32xf32>
    %309 = arith.mulf %304, %308 : vector<16x32xf32>
    %310 = vector.broadcast %173 : vector<1x32xf32> to vector<16x32xf32>
    %311 = arith.mulf %309, %310 : vector<16x32xf32>
    %312 = vector.broadcast %174 : vector<1x32xf32> to vector<16x32xf32>
    %313 = arith.addf %311, %312 : vector<16x32xf32>
    %314 = vector.shape_cast %313 : vector<16x32xf32> to vector<2x8x32xf32>
    %cst_80 = arith.constant dense<0.000000e+00> : vector<2x32xf32>
    %315 = vector.multi_reduction <add>, %314, %cst_80 [1] : vector<2x8x32xf32> to vector<2x32xf32>
    %cst_81 = arith.constant 8.000000e+00 : f32
    %316 = vector.broadcast %cst_81 : f32 to vector<2x32xf32>
    %317 = arith.divf %315, %316 : vector<2x32xf32>
    %318 = arith.truncf %317 : vector<2x32xf32> to vector<2x32xbf16>
    %c0_82 = arith.constant 0 : index
    %c0_83 = arith.constant 0 : index
    %319 = vector.load %arg4[%c0_82, %c0_83] : memref<32x16xbf16, #tpu.memory_space<vmem>>, vector<32x16xbf16>
    %cst_84 = arith.constant dense<0.000000e+00> : vector<2x16xf32>
    %320 = tpu.matmul %318, %319, %cst_84 {dimension_numbers = #tpu.dot_dimension_numbers<[1], [0], [0], [1], [0, 0, 1, 1], [], []>} : vector<2x32xbf16>, vector<32x16xbf16>, vector<2x16xf32> -> vector<2x16xf32>
    %c0_85 = arith.constant 0 : index
    %c0_86 = arith.constant 0 : index
    %321 = vector.load %arg5[%c0_85, %c0_86] : memref<1x16xf32, #tpu.memory_space<vmem>>, vector<1x16xf32>
    %322 = vector.broadcast %321 : vector<1x16xf32> to vector<2x16xf32>
    %323 = arith.addf %320, %322 : vector<2x16xf32>
    %c0_87 = arith.constant 0 : index
    %c0_88 = arith.constant 0 : index
    %324 = vector.load %arg6[%c0_87, %c0_88] : memref<2x16xf32, #tpu.memory_space<vmem>>, vector<2x16xf32>
    tpu.vector_store %arg6[%c0_87, %c0_88], %323 {strides = array<i32>} : memref<2x16xf32, #tpu.memory_space<vmem>>, vector<2x16xf32>,
    return
  }
}

</mosaic_0001>

<bundles_post_ra>
// kernel: tpu_custom_call.1
= control target key start
LH: loop header
LB: loop body
LE: loop exit
PB: predicated region body
PF: predicated region fallthrough
CT: control target
= control target key end

     0   :  { %v3362_v1 = vmov 0.0   ;;  %vm3363_vm0 = vmmov 0   ;;  %vm65_vm1 = vcmask 261120   ;;  %s4022_s0 = inlined_call_operand.vmem [shape: f32[2,8,32], index: 0, kind: input, shape index: {}]   ;;  %s4023_s1 = inlined_call_operand.vmem [shape: bf16[2,32,256], index: 1, kind: input, shape index: {}]   ;;  %s4024_s2 = inlined_call_operand.vmem [shape: bf16[2,128,32], index: 2, kind: input, shape index: {}]   ;;  %s4025_s3 = inlined_call_operand.vmem [shape: f32[2,8,128], index: 3, kind: input, shape index: {}]   ;;  %s4026_s4 = inlined_call_operand.vmem [shape: bf16[32,16], index: 4, kind: input, shape index: {}]   ;;  %s4027_s5 = inlined_call_operand.vmem [shape: f32[1,16], index: 5, kind: input, shape index: {}]   ;;  %s4028_s6 = inlined_call_operand.hbm [shape: f32[2,16], index: 6, kind: output, shape index: {}]  }
   0x1   :  { %v3418_v0 = vld [vmem:[%s4023_s1 + $0x10] ss:$8 sps:$4 sm:$0xff]   ;;  %2894 = vmatprep.subr.bf16.mxu1 %v3362_v1  ;;  %2898 = vmatprep.mubr.msk.bf16.mxu1 %vm3363_vm0, %v3362_v1  ;;  %v3427_v2 = vld [vmem:[%s4023_s1] ss:$8 sps:$4 sm:$0xff]  }
   0x2   :  { %2895 = vmatpush3.bf16.msra.mxu1 %v3418_v0  ;;  %v3432_v3 = vld [vmem:[%s4022_s0] sm:$0xff]  ;;  %2908 = vmatprep.subr.bf16.mxu0 %v3362_v1  ;;  %v3439_v4 = vld [vmem:[%s4022_s0 + $0x8] sm:$0xff] }
   0x3   :  { %2896 = vmatprep.subr.bf16.mxu1 %v3362_v1  ;;  %2910 = vmatprep.mubr.msk.bf16.mxu0 %vm3363_vm0, %v3362_v1  ;;  %v48_v5 = vpack.c.bf16 %v3439_v4, %v3432_v3 }
   0x6   :  { %2897 = vmatpush3.bf16.msra.mxu1 %v3427_v2 }
   0x7   :  { %2902 = vmatprep.subr.bf16.mxu1 %v3362_v1 }
   0x9   :  { %2899 = vmatmul.mubr.msk.bf16.vlgmr.msra.gmra.mxu1 %vm65_vm1, %v48_v5 }
   0xa   :  { %2904 = vmatprep.mubr.msk.bf16.mxu1 %vm3363_vm0, %v3362_v1 }
   0xb   :  { %11 = vsyncpa [#allocation3], 0  ;;  %v49_v6 = vlaneseq  ;;  %v3456_v9 = vld [vmem:[%s4025_s3] sm:$0xff]  ;;  %s3364_s30 = smov 96   ;;  %vm115_vm2 = vcmask 64512   ;;  %s3365_s7 = smov 64  }
   0xc   :  { %s3366_s8 = smov 88   ;;  %vm240_vm3 = vcmask 1043456   ;;  %s3367_s9 = smov 120   ;;  %vm1018_vm4 = vcmask 130048   ;;  %vm1021_vm5 = vcmask 195584   ;;  %vm2630_vm6 = vcmask 1041409  }
   0xd   :  { %v3450_v7 = vshrl.u32 %v49_v6, 7  ;;  %s3368_s10 = smov 56   ;;  %s3369_s11 = smov 80   ;;  %vm2688_vm7 = vcmask 123904  }
   0xe   :  { %s3370_s12 = smov 112   ;;  %s3371_s13 = smov 48  }
   0xf   :  { %v51_v8 = vsub.s32 0, %v3450_v7  ;;  %s3372_s14 = smov 72   ;;  %s3373_s15 = smov 104  }
  0x10   :  { %s3374_s16 = smov 40   ;;  %s3375_s17 = smov 32  }
  0x11   :  { %v52_v10 = vrot.slane %v3456_v9, %v51_v8  ;;  %s3376_s18 = smov 8   ;;  %s3377_s19 = smov 16  }
  0x12   :  { %s3378_s24 = smov 24   ;;  %s3379_s23 = smov [#allocation2]  }
  0x13   :  { %s2696_s25 = sshll.u32 %s3379_s23, 4  ;;  %s2697_s25 = int_to_ptr.vmem [resolvable:$true] %s2696_s25 }
  0x14   :  { %s3340_s26 = scalar_lea.vmem %s2697_s25, 32  ;;  %p3345_p1 = scmp.lt.s32.totalorder %s2697_s25, %s2697_s25 }
  0x15   :  { %p3341_p0 = scmp.ne.s32.totalorder %s2697_s25, %s3340_s26  ;;  %p3346_p2 = scmp.lt.s32.totalorder %s3340_s26, %s3340_s26 }
  0x17   :  { %p3347_p3 = por %p3346_p2, %p3345_p1 }
  0x19   :  { %p3348_p4 = pnand %p3347_p3, %p3341_p0 }
  0xc9   :  { %v103_v11 = vpop.f32.mrf.mxu1 }
  0xca   :  { %v104_v12 = vadd.f32 %v103_v11, %v52_v10 }
  0xcb   :  { %v2900_v13 = vpop.f32.mrf.mxu1 }
  0xcc   :  { %v3461_v14 = vpack.c.bf16 %v104_v12, %v104_v12 }
  0xcd   :  { %v106_v15 = vpop.f32.mrf.mxu1 }
  0xce   :  { %v107_v16 = vadd.f32 %v106_v15, %v52_v10  ;;  %113 = vrot.lane.b32.xlu0 %v3461_v14, %s3364_s30 }
  0xcf   :  { %v2901_v17 = vpop.f32.mrf.mxu1 }
  0xd0   :  { %v3465_v18 = vpack.c.bf16 %v107_v16, %v107_v16 }
  0xd2   :  { %163 = vrot.lane.b32.xlu0 %v3465_v18, %s3364_s30 }
 0x140   :  { %v114_v19 = vpop.permute.xlu0 %113 }
 0x141   :  { %v120_v20 = vsel %vm115_vm2, %v114_v19, 0 }
 0x142   :  { %2903 = vmatpush3.bf16.xpose.msra.mxu1 %v120_v20 }
 0x143   :  { %2914 = vmatprep.subr.bf16.mxu1 %v3362_v1 }
 0x144   :  { %v164_v21 = vpop.permute.xlu0 %163 }
 0x145   :  { %v169_v22 = vsel %vm115_vm2, %v164_v21, 0 }
 0x146   :  { %2909 = vmatpush3.bf16.xpose.msra.mxu0 %v169_v22 }
 0x147   :  { %2920 = vmatprep.subr.bf16.mxu0 %v3362_v1 }
 0x149   :  { %2905 = vmatmul.mubr.msk.bf16.vlgmr.msra.gmra.mxu1 %vm115_vm2, %v3461_v14 }
 0x14a   :  { %2916 = vmatprep.mubr.msk.bf16.mxu1 %vm3363_vm0, %v3362_v1 }
 0x14d   :  { %2911 = vmatmul.mubr.msk.bf16.vlgmr.msra.gmra.mxu0 %vm115_vm2, %v3465_v18 }
 0x14e   :  { %2922 = vmatprep.mubr.msk.bf16.mxu0 %vm3363_vm0, %v3362_v1 }
 0x209   :  { %v156_v23 = vpop.f32.mrf.mxu1 }
 0x20a   :  { %v211_v24 = vsel %vm115_vm2, %v156_v23, -inf }
 0x20b   :  { %212 = vmax.xlane.f32.xlu1 %v211_v24  ;;  %v2906_v25 = vpop.f32.mrf.mxu1 }
 0x20d   :  { %v159_v26 = vpop.f32.mrf.mxu1  ;;  %v205_v27 = vpop.f32.mrf.mxu0 }
 0x20e   :  { %v214_v28 = vsel %vm115_vm2, %v205_v27, -inf }
 0x20f   :  { %v2912_v29 = vpop.f32.mrf.mxu0  ;;  %215 = vmax.xlane.f32.xlu1 %v214_v28  ;;  %v2907_v30 = vpop.f32.mrf.mxu1 }
 0x211   :  { %v208_v31 = vpop.f32.mrf.mxu0 }
 0x213   :  { %v2913_v32 = vpop.f32.mrf.mxu0 }
 0x220   :  { %235 = vrot.lane.b32.xlu1 %v3461_v14, %s3365_s7 }
 0x224   :  { %284 = vrot.lane.b32.xlu1 %v3465_v18, %s3365_s7 }
 0x228   :  { %334 = vrot.lane.b32.xlu1 %v3461_v14, %s3366_s8 }
 0x294   :  { %v213_v33 = vpop.xlane.xlu1 %212 }
 0x295   :  { %v217_v34 = vsub.f32 %v156_v23, %v213_v33 }
 0x297   :  { %v219_v35 = vmul.f32 1.442695, %v217_v34 }
 0x298   :  { %v216_v36 = vpop.xlane.xlu1 %215 }
 0x299   :  { %3260 = vpow2.f32 %v219_v35  ;;  %v218_v37 = vsub.f32 %v205_v27, %v216_v36 }
 0x29b   :  { %v221_v38 = vmul.f32 1.442695, %v218_v37 }
 0x29c   :  { %v236_v39 = vpop.permute.xlu1 %235 }
 0x29d   :  { %3262 = vpow2.f32 %v221_v38  ;;  %v242_v40 = vsel %vm240_vm3, %v236_v39, 0 }
 0x29e   :  { %2915 = vmatpush3.bf16.msra.mxu1 %v242_v40 }
 0x29f   :  { %2926 = vmatprep.subr.bf16.mxu1 %v3362_v1 }
 0x2a0   :  { %v285_v41 = vpop.permute.xlu1 %284 }
 0x2a1   :  { %v290_v42 = vsel %vm240_vm3, %v285_v41, 0 }
 0x2a2   :  { %2921 = vmatpush3.bf16.msra.mxu0 %v290_v42 }
 0x2a3   :  { %2932 = vmatprep.subr.bf16.mxu0 %v3362_v1 }
 0x2a4   :  { %v335_v47 = vpop.permute.xlu1 %334 }
 0x2a5   :  { %v340_v54 = vsel %vm115_vm2, %v335_v47, 0 }
 0x2a6   :  { %v3261_v43 = vpop.eup %3260 }
 0x2a7   :  { %v223_v44 = vsel %vm115_vm2, %v3261_v43, 0.0 }
 0x2a8   :  { %224 = vadd.xlane.f32.xlu0 %v223_v44 }
 0x2aa   :  { %v3263_v45 = vpop.eup %3262 }
 0x2ab   :  { %v226_v46 = vsel %vm115_vm2, %v3263_v45, 0.0 }
 0x2ac   :  { %227 = vadd.xlane.f32.xlu1 %v226_v46 }
 0x2bd   :  { %384 = vrot.lane.b32.xlu1 %v3465_v18, %s3366_s8 }
 0x2be   :  { %332 = vrot.lane.b32.xlu0 %v3461_v14, %s3367_s9 }
 0x2c1   :  { %382 = vrot.lane.b32.xlu1 %v3465_v18, %s3367_s9 }
 0x331   :  { %v225_v48 = vpop.xlane.xlu0 %224 }
 0x332   :  { %3264 = vrcp.f32 %v225_v48 }
 0x335   :  { %v228_v49 = vpop.xlane.xlu1 %227  ;;  %v333_v59 = vpop.permute.xlu0 %332 }
 0x336   :  { %3266 = vrcp.f32 %v228_v49 }
 0x339   :  { %v385_v56 = vpop.permute.xlu1 %384 }
 0x33a   :  { %v390_v58 = vsel %vm115_vm2, %v385_v56, 0 }
 0x33d   :  { %v383_v60 = vpop.permute.xlu1 %382 }
 0x33f   :  { %v3265_v50 = vpop.eup %3264 }
 0x340   :  { %v231_v51 = vmul.f32 %v3265_v50, %v3261_v43 }
 0x342   :  { %v233_v52 = vpack.c.bf16 %v231_v51, %v231_v51 }
 0x343   :  { %v3267_v53 = vpop.eup %3266 }
 0x344   :  { %2917 = vmatmul.mubr.msk.bf16.vlgmr.msra.gmra.mxu1 %vm115_vm2, %v233_v52  ;;  %v232_v55 = vmul.f32 %v3267_v53, %v3263_v45 }
 0x345   :  { %2927 = vmatpush3.bf16.xpose.msra.mxu1 %v340_v54  ;;  %2928 = vmatprep.mubr.msk.bf16.mxu1 %vm3363_vm0, %v3362_v1 }
 0x346   :  { %v234_v57 = vpack.c.bf16 %v232_v55, %v232_v55  ;;  %2938 = vmatprep.subr.bf16.mxu1 %v3362_v1 }
 0x348   :  { %2923 = vmatmul.mubr.msk.bf16.vlgmr.msra.gmra.mxu0 %vm115_vm2, %v234_v57 }
 0x349   :  { %2933 = vmatpush3.bf16.xpose.msra.mxu0 %v390_v58  ;;  %2934 = vmatprep.mubr.msk.bf16.mxu0 %vm3363_vm0, %v3362_v1 }
 0x34a   :  { %2944 = vmatprep.subr.bf16.mxu0 %v3362_v1 }
 0x34c   :  { %2929 = vmatmul.mubr.msk.bf16.vlgmr.msra.gmra.mxu1 %vm115_vm2, %v333_v59 }
 0x34d   :  { %2940 = vmatprep.mubr.msk.bf16.mxu1 %vm3363_vm0, %v3362_v1 }
 0x350   :  { %2935 = vmatmul.mubr.msk.bf16.vlgmr.msra.gmra.mxu0 %vm115_vm2, %v383_v60 }
 0x351   :  { %2946 = vmatprep.mubr.msk.bf16.mxu0 %vm3363_vm0, %v3362_v1 }
 0x404   :  { %v3517_v61 = vpop.f32.mrf.mxu1 }
 0x406   :  { %v2918_v62 = vpop.f32.mrf.mxu1 }
 0x408   :  { %v281_v63 = vpop.f32.mrf.mxu1  ;;  %v3519_v5 = vpop.f32.mrf.mxu0 }
 0x40a   :  { %v2919_v6 = vpop.f32.mrf.mxu1  ;;  %v2924_v10 = vpop.f32.mrf.mxu0 }
 0x40c   :  { %v329_v11 = vpop.f32.mrf.mxu0  ;;  %v376_v12 = vpop.f32.mrf.mxu1 }
 0x40d   :  { %v432_v13 = vsel %vm115_vm2, %v376_v12, -inf }
 0x40e   :  { %v2925_v15 = vpop.f32.mrf.mxu0  ;;  %433 = vmax.xlane.f32.xlu1 %v432_v13  ;;  %v2930_v16 = vpop.f32.mrf.mxu1 }
 0x410   :  { %v379_v17 = vpop.f32.mrf.mxu1  ;;  %v426_v19 = vpop.f32.mrf.mxu0 }
 0x411   :  { %v435_v20 = vsel %vm115_vm2, %v426_v19, -inf }
 0x412   :  { %436 = vmax.xlane.f32.xlu0 %v435_v20  ;;  %v2931_v21 = vpop.f32.mrf.mxu1  ;;  %v2936_v22 = vpop.f32.mrf.mxu0 }
 0x414   :  { %v429_v23 = vpop.f32.mrf.mxu0 }
 0x416   :  { %v2937_v24 = vpop.f32.mrf.mxu0 }
 0x41f   :  { %456 = vrot.lane.b32.xlu1 %v3461_v14, %s3368_s10 }
 0x423   :  { %554 = vrot.lane.b32.xlu1 %v3461_v14, %s3369_s11 }
 0x428   :  { %504 = vrot.lane.b32.xlu0 %v3465_v18, %s3368_s10 }
 0x42c   :  { %552 = vrot.lane.b32.xlu0 %v3461_v14, %s3370_s12 }
 0x497   :  { %v434_v25 = vpop.xlane.xlu1 %433 }
 0x498   :  { %v438_v26 = vsub.f32 %v376_v12, %v434_v25 }
 0x49a   :  { %v440_v27 = vmul.f32 1.442695, %v438_v26 }
 0x49b   :  { %v437_v28 = vpop.xlane.xlu0 %436  ;;  %v457_v29 = vpop.permute.xlu1 %456 }
 0x49c   :  { %3268 = vpow2.f32 %v440_v27  ;;  %v439_v30 = vsub.f32 %v426_v19, %v437_v28  ;;  %v462_v31 = vsel %vm240_vm3, %v457_v29, 0 }
 0x49d   :  { %2939 = vmatpush3.bf16.msra.mxu1 %v462_v31 }
 0x49e   :  { %v442_v32 = vmul.f32 1.442695, %v439_v30  ;;  %2950 = vmatprep.subr.bf16.mxu1 %v3362_v1 }
 0x49f   :  { %v505_v33 = vpop.permute.xlu0 %504  ;;  %v555_v39 = vpop.permute.xlu1 %554 }
 0x4a0   :  { %3270 = vpow2.f32 %v442_v32  ;;  %v510_v34 = vsel %vm240_vm3, %v505_v33, 0  ;;  %v560_v46 = vsel %vm115_vm2, %v555_v39, 0 }
 0x4a1   :  { %2945 = vmatpush3.bf16.msra.mxu0 %v510_v34 }
 0x4a2   :  { %2956 = vmatprep.subr.bf16.mxu0 %v3362_v1 }
 0x4a3   :  { %v553_v51 = vpop.permute.xlu0 %552 }
 0x4a9   :  { %v3269_v35 = vpop.eup %3268 }
 0x4aa   :  { %v444_v36 = vsel %vm115_vm2, %v3269_v35, 0.0 }
 0x4ab   :  { %445 = vadd.xlane.f32.xlu1 %v444_v36 }
 0x4ad   :  { %v3271_v37 = vpop.eup %3270 }
 0x4ae   :  { %v447_v38 = vsel %vm115_vm2, %v3271_v37, 0.0 }
 0x4af   :  { %448 = vadd.xlane.f32.xlu1 %v447_v38 }
 0x4c0   :  { %604 = vrot.lane.b32.xlu1 %v3465_v18, %s3369_s11 }
 0x4c4   :  { %602 = vrot.lane.b32.xlu1 %v3465_v18, %s3370_s12 }
 0x534   :  { %v446_v40 = vpop.xlane.xlu1 %445 }
 0x535   :  { %3272 = vrcp.f32 %v446_v40 }
 0x538   :  { %v449_v41 = vpop.xlane.xlu1 %448 }
 0x539   :  { %3274 = vrcp.f32 %v449_v41 }
 0x53c   :  { %v605_v48 = vpop.permute.xlu1 %604 }
 0x53d   :  { %v610_v50 = vsel %vm115_vm2, %v605_v48, 0 }
 0x540   :  { %v603_v52 = vpop.permute.xlu1 %602 }
 0x542   :  { %v3273_v42 = vpop.eup %3272 }
 0x543   :  { %v452_v43 = vmul.f32 %v3273_v42, %v3269_v35 }
 0x545   :  { %v454_v44 = vpack.c.bf16 %v452_v43, %v452_v43 }
 0x546   :  { %v3275_v45 = vpop.eup %3274 }
 0x547   :  { %2941 = vmatmul.mubr.msk.bf16.vlgmr.msra.gmra.mxu1 %vm115_vm2, %v454_v44  ;;  %v453_v47 = vmul.f32 %v3275_v45, %v3271_v37 }
 0x548   :  { %2951 = vmatpush3.bf16.xpose.msra.mxu1 %v560_v46  ;;  %2952 = vmatprep.mubr.msk.bf16.mxu1 %vm3363_vm0, %v3362_v1 }
 0x549   :  { %v455_v49 = vpack.c.bf16 %v453_v47, %v453_v47  ;;  %2962 = vmatprep.subr.bf16.mxu1 %v3362_v1 }
 0x54b   :  { %2947 = vmatmul.mubr.msk.bf16.vlgmr.msra.gmra.mxu0 %vm115_vm2, %v455_v49 }
 0x54c   :  { %2957 = vmatpush3.bf16.xpose.msra.mxu0 %v610_v50  ;;  %2958 = vmatprep.mubr.msk.bf16.mxu0 %vm3363_vm0, %v3362_v1 }
 0x54d   :  { %2968 = vmatprep.subr.bf16.mxu0 %v3362_v1 }
 0x54f   :  { %2953 = vmatmul.mubr.msk.bf16.vlgmr.msra.gmra.mxu1 %vm115_vm2, %v553_v51 }
 0x550   :  { %2964 = vmatprep.mubr.msk.bf16.mxu1 %vm3363_vm0, %v3362_v1 }
 0x553   :  { %2959 = vmatmul.mubr.msk.bf16.vlgmr.msra.gmra.mxu0 %vm115_vm2, %v603_v52 }
 0x554   :  { %2970 = vmatprep.mubr.msk.bf16.mxu0 %vm3363_vm0, %v3362_v1 }
 0x607   :  { %v3557_v53 = vpop.f32.mrf.mxu1 }
 0x609   :  { %v2942_v54 = vpop.f32.mrf.mxu1 }
 0x60b   :  { %v501_v55 = vpop.f32.mrf.mxu1  ;;  %v3559_v56 = vpop.f32.mrf.mxu0 }
 0x60c   :  { %v3200_v57 = vpack.i.bf16 %v3559_v56, %v3557_v53 }
 0x60d   :  { %v2943_v58 = vpop.f32.mrf.mxu1  ;;  %v2948_v59 = vpop.f32.mrf.mxu0 }
 0x60f   :  { %v549_v60 = vpop.f32.mrf.mxu0  ;;  %v596_v62 = vpop.f32.mrf.mxu1 }
 0x610   :  { %v652_v63 = vsel %vm115_vm2, %v596_v62, -inf }
 0x611   :  { %v2949_v6 = vpop.f32.mrf.mxu0  ;;  %653 = vmax.xlane.f32.xlu0 %v652_v63  ;;  %v2954_v10 = vpop.f32.mrf.mxu1 }
 0x613   :  { %v599_v11 = vpop.f32.mrf.mxu1  ;;  %v646_v12 = vpop.f32.mrf.mxu0 }
 0x614   :  { %v655_v13 = vsel %vm115_vm2, %v646_v12, -inf }
 0x615   :  { %656 = vmax.xlane.f32.xlu1 %v655_v13  ;;  %v2955_v15 = vpop.f32.mrf.mxu1  ;;  %v2960_v16 = vpop.f32.mrf.mxu0 }
 0x617   :  { %v649_v17 = vpop.f32.mrf.mxu0 }
 0x619   :  { %v2961_v19 = vpop.f32.mrf.mxu0 }
 0x626   :  { %676 = vrot.lane.b32.xlu1 %v3461_v14, %s3371_s13 }
 0x62a   :  { %774 = vrot.lane.b32.xlu1 %v3461_v14, %s3372_s14 }
 0x62e   :  { %824 = vrot.lane.b32.xlu1 %v3465_v18, %s3372_s14 }
 0x632   :  { %822 = vrot.lane.b32.xlu1 %v3465_v18, %s3373_s15 }
 0x69a   :  { %v654_v20 = vpop.xlane.xlu0 %653 }
 0x69b   :  { %v658_v21 = vsub.f32 %v596_v62, %v654_v20 }
 0x69d   :  { %v660_v22 = vmul.f32 1.442695, %v658_v21 }
 0x69e   :  { %v657_v23 = vpop.xlane.xlu1 %656 }
 0x69f   :  { %3276 = vpow2.f32 %v660_v22  ;;  %v659_v24 = vsub.f32 %v646_v12, %v657_v23 }
 0x6a1   :  { %v662_v25 = vmul.f32 1.442695, %v659_v24 }
 0x6a2   :  { %v677_v26 = vpop.permute.xlu1 %676 }
 0x6a3   :  { %3278 = vpow2.f32 %v662_v25  ;;  %v682_v27 = vsel %vm240_vm3, %v677_v26, 0 }
 0x6a4   :  { %2963 = vmatpush3.bf16.msra.mxu1 %v682_v27 }
 0x6a5   :  { %2974 = vmatprep.subr.bf16.mxu1 %v3362_v1 }
 0x6a6   :  { %v775_v37 = vpop.permute.xlu1 %774 }
 0x6a7   :  { %v780_v41 = vsel %vm115_vm2, %v775_v37, 0 }
 0x6aa   :  { %v825_v43 = vpop.permute.xlu1 %824 }
 0x6ab   :  { %v830_v45 = vsel %vm115_vm2, %v825_v43, 0 }
 0x6ac   :  { %v3277_v28 = vpop.eup %3276 }
 0x6ad   :  { %v664_v29 = vsel %vm115_vm2, %v3277_v28, 0.0 }
 0x6ae   :  { %665 = vadd.xlane.f32.xlu0 %v664_v29  ;;  %v823_v47 = vpop.permute.xlu1 %822 }
 0x6b0   :  { %v3279_v30 = vpop.eup %3278 }
 0x6b1   :  { %v667_v31 = vsel %vm115_vm2, %v3279_v30, 0.0 }
 0x6b2   :  { %668 = vadd.xlane.f32.xlu0 %v667_v31 }
 0x6c8   :  { %724 = vrot.lane.b32.xlu0 %v3465_v18, %s3371_s13 }
 0x6cc   :  { %772 = vrot.lane.b32.xlu0 %v3461_v14, %s3373_s15 }
 0x737   :  { %v666_v32 = vpop.xlane.xlu0 %665 }
 0x738   :  { %3280 = vrcp.f32 %v666_v32 }
 0x73b   :  { %v669_v33 = vpop.xlane.xlu0 %668 }
 0x73c   :  { %3282 = vrcp.f32 %v669_v33 }
 0x73f   :  { %v725_v34 = vpop.permute.xlu0 %724 }
 0x740   :  { %v730_v35 = vsel %vm240_vm3, %v725_v34, 0 }
 0x741   :  { %2969 = vmatpush3.bf16.msra.mxu0 %v730_v35  ;;  %v3235_v35 = vld [vmem:[%s4023_s1 + $0x4] ss:$8 sps:$4 sm:$0xff]  }
 0x742   :  { %2980 = vmatprep.subr.bf16.mxu0 %v3362_v1 }
 0x743   :  { %v773_v46 = vpop.permute.xlu0 %772 }
 0x745   :  { %v3281_v36 = vpop.eup %3280 }
 0x746   :  { %v672_v38 = vmul.f32 %v3281_v36, %v3277_v28 }
 0x748   :  { %v674_v39 = vpack.c.bf16 %v672_v38, %v672_v38 }
 0x749   :  { %v3283_v40 = vpop.eup %3282 }
 0x74a   :  { %2965 = vmatmul.mubr.msk.bf16.vlgmr.msra.gmra.mxu1 %vm115_vm2, %v674_v39  ;;  %v673_v42 = vmul.f32 %v3283_v40, %v3279_v30 }
 0x74b   :  { %2975 = vmatpush3.bf16.xpose.msra.mxu1 %v780_v41  ;;  %2976 = vmatprep.mubr.msk.bf16.mxu1 %vm3363_vm0, %v3362_v1 }
 0x74c   :  { %v675_v44 = vpack.c.bf16 %v673_v42, %v673_v42  ;;  %2986 = vmatprep.subr.bf16.mxu1 %v3362_v1 }
 0x74e   :  { %2971 = vmatmul.mubr.msk.bf16.vlgmr.msra.gmra.mxu0 %vm115_vm2, %v675_v44 }
 0x74f   :  { %2981 = vmatpush3.bf16.xpose.msra.mxu0 %v830_v45  ;;  %2982 = vmatprep.mubr.msk.bf16.mxu0 %vm3363_vm0, %v3362_v1 }
 0x750   :  { %2992 = vmatprep.subr.bf16.mxu0 %v3362_v1 }
 0x752   :  { %2977 = vmatmul.mubr.msk.bf16.vlgmr.msra.gmra.mxu1 %vm115_vm2, %v773_v46 }
 0x753   :  { %2988 = vmatprep.mubr.msk.bf16.mxu1 %vm3363_vm0, %v3362_v1 }
 0x756   :  { %2983 = vmatmul.mubr.msk.bf16.vlgmr.msra.gmra.mxu0 %vm115_vm2, %v823_v47 }
 0x757   :  { %2994 = vmatprep.mubr.msk.bf16.mxu0 %vm3363_vm0, %v3362_v1 }
 0x80a   :  { %v718_v48 = vpop.f32.mrf.mxu1 }
 0x80c   :  { %v2966_v49 = vpop.f32.mrf.mxu1 }
 0x80e   :  { %v721_v50 = vpop.f32.mrf.mxu1  ;;  %v766_v51 = vpop.f32.mrf.mxu0 }
 0x80f   :  { %v3205_v52 = vpack.i.bf16 %v766_v51, %v718_v48 }
 0x810   :  { %v2967_v54 = vpop.f32.mrf.mxu1  ;;  %v2972_v55 = vpop.f32.mrf.mxu0 }
 0x812   :  { %v769_v58 = vpop.f32.mrf.mxu0  ;;  %v816_v59 = vpop.f32.mrf.mxu1 }
 0x813   :  { %v872_v60 = vsel %vm115_vm2, %v816_v59, -inf }
 0x814   :  { %v2973_v62 = vpop.f32.mrf.mxu0  ;;  %873 = vmax.xlane.f32.xlu0 %v872_v60  ;;  %v2978_v63 = vpop.f32.mrf.mxu1 }
 0x816   :  { %v819_v6 = vpop.f32.mrf.mxu1  ;;  %v866_v10 = vpop.f32.mrf.mxu0 }
 0x817   :  { %v875_v11 = vsel %vm115_vm2, %v866_v10, -inf }
 0x818   :  { %876 = vmax.xlane.f32.xlu1 %v875_v11  ;;  %v2979_v12 = vpop.f32.mrf.mxu1  ;;  %v2984_v13 = vpop.f32.mrf.mxu0 }
 0x81a   :  { %v869_v15 = vpop.f32.mrf.mxu0 }
 0x81c   :  { %v2985_v16 = vpop.f32.mrf.mxu0 }
 0x829   :  { %896 = vrot.lane.b32.xlu1 %v3461_v14, %s3374_s16 }
 0x82d   :  { %1031 = vrot.lane.b32.xlu1 %v3418_v0, %s3375_s17 }
 0x831   :  { %3201 = vrot.lane.b32.xlu1 %v3200_v57, %s3376_s18 }
 0x89d   :  { %v874_v17 = vpop.xlane.xlu0 %873 }
 0x89e   :  { %v878_v19 = vsub.f32 %v816_v59, %v874_v17 }
 0x8a0   :  { %v880_v20 = vmul.f32 1.442695, %v878_v19 }
 0x8a1   :  { %v877_v21 = vpop.xlane.xlu1 %876 }
 0x8a2   :  { %3284 = vpow2.f32 %v880_v20  ;;  %v879_v22 = vsub.f32 %v866_v10, %v877_v21 }
 0x8a4   :  { %v882_v23 = vmul.f32 1.442695, %v879_v22 }
 0x8a5   :  { %v897_v24 = vpop.permute.xlu1 %896 }
 0x8a6   :  { %3286 = vpow2.f32 %v882_v23  ;;  %v902_v14 = vsel %vm240_vm3, %v897_v24, 0 }
 0x8a7   :  { %2987 = vmatpush3.bf16.msra.mxu1 %v902_v14 }
 0x8a8   :  { %2998 = vmatprep.subr.bf16.mxu1 %v3362_v1 }
 0x8a9   :  { %v1032_v32 = vpop.permute.xlu1 %1031 }
 0x8ad   :  { %v3202_v47 = vpop.permute.xlu1 %3201 }
 0x8ae   :  { %v3204_v48 = vunpack.i.h.bf16 %v3202_v47  ;;  %v3203_v49 = vunpack.i.l.bf16 %v3202_v47 }
 0x8af   :  { %v3285_v0 = vpop.eup %3284 }
 0x8b0   :  { %v884_v25 = vsel %vm115_vm2, %v3285_v0, 0.0  ;;  %v1017_v54 = vsel %vm115_vm2, %v3519_v5, %v3204_v48  ;;  %v1016_v55 = vsel %vm115_vm2, %v3517_v61, %v3203_v49  ;;  %v1027_v5 = vsub.s32 1, %v3450_v7  ;;  %v3241_v48 = vld [vmem:[%s4024_s2 + $0x10] sm:$0xff]   ;;  %v3242_v49 = vld [vmem:[%s4024_s2 + $0x8] sm:$0xff]  }
 0x8b1   :  { %885 = vadd.xlane.f32.xlu0 %v884_v25 }
 0x8b2   :  { %v1028_v61 = vrot.slane %v3456_v9, %v1027_v5 }
 0x8b3   :  { %v3287_v53 = vpop.eup %3286 }
 0x8b4   :  { %v887_v56 = vsel %vm115_vm2, %v3287_v53, 0.0 }
 0x8b5   :  { %888 = vadd.xlane.f32.xlu0 %v887_v56 }
 0x8cb   :  { %944 = vrot.lane.b32.xlu0 %v3465_v18, %s3374_s16 }
 0x8cf   :  { %3206 = vrot.lane.b32.xlu0 %v3205_v52, %s3377_s19 }
 0x8d3   :  { %1029 = vrot.lane.b32.xlu0 %v3427_v2, %s3375_s17  ;;  %v3232_v2 = vld [vmem:[%s4023_s1 + $0x14] ss:$8 sps:$4 sm:$0xff]  }
 0x93a   :  { %v886_v57 = vpop.xlane.xlu0 %885 }
 0x93b   :  { %3288 = vrcp.f32 %v886_v57 }
 0x93e   :  { %v889_v26 = vpop.xlane.xlu0 %888 }
 0x93f   :  { %3290 = vrcp.f32 %v889_v26 }
 0x942   :  { %v945_v27 = vpop.permute.xlu0 %944 }
 0x943   :  { %v950_v28 = vsel %vm240_vm3, %v945_v27, 0  ;;  %v3237_v27 = vld [vmem:[%s4024_s2 + $0x30] sm:$0xff]  }
 0x944   :  { %2993 = vmatpush3.bf16.msra.mxu0 %v950_v28  ;;  %v3238_v28 = vld [vmem:[%s4024_s2 + $0x28] sm:$0xff]  }
 0x945   :  { %3006 = vmatprep.subr.bf16.mxu0 %v3362_v1 }
 0x946   :  { %v3207_v36 = vpop.permute.xlu0 %3206 }
 0x947   :  { %v3209_v50 = vunpack.i.h.bf16 %v3207_v36  ;;  %v3208_v51 = vunpack.i.l.bf16 %v3207_v36 }
 0x948   :  { %v3289_v29 = vpop.eup %3288 }
 0x949   :  { %v892_v30 = vmul.f32 %v3289_v29, %v3285_v0  ;;  %v1020_v60 = vsel %vm1018_vm4, %v1017_v54, %v3209_v50  ;;  %v1019_v62 = vsel %vm1018_vm4, %v1016_v55, %v3208_v51  ;;  %v3239_v29 = vld [vmem:[%s4024_s2 + $0x20] sm:$0xff]   ;;  %v1123_v51 = vsub.s32 2, %v3450_v7 }
 0x94a   :  { %v1030_v37 = vpop.permute.xlu0 %1029  ;;  %v3243_v50 = vld [vmem:[%s4024_s2] sm:$0xff]  }
 0x94b   :  { %v894_v31 = vpack.c.bf16 %v892_v30, %v892_v30  ;;  %v3240_v30 = vld [vmem:[%s4024_s2 + $0x18] sm:$0xff]  }
 0x94c   :  { %v3291_v18 = vpop.eup %3290 }
 0x94d   :  { %2989 = vmatmul.mubr.msk.bf16.vlgmr.msra.gmra.mxu1 %vm115_vm2, %v894_v31  ;;  %v893_v33 = vmul.f32 %v3291_v18, %v3287_v53 }
 0x94e   :  { %2999 = vmatpush3.bf16.msra.mxu1 %v1032_v32  ;;  %3002 = vmatprep.mubr.msk.bf16.mxu1 %vm3363_vm0, %v3362_v1 }
 0x94f   :  { %v895_v34 = vpack.c.bf16 %v893_v33, %v893_v33  ;;  %3000 = vmatprep.subr.bf16.mxu1 %v3362_v1 }
 0x951   :  { %2995 = vmatmul.mubr.msk.bf16.vlgmr.msra.gmra.mxu0 %vm115_vm2, %v895_v34 }
 0x952   :  { %3007 = vmatpush3.bf16.msra.mxu0 %v3232_v2  ;;  %3010 = vmatprep.mubr.msk.bf16.mxu0 %vm3363_vm0, %v3362_v1 }
 0x953   :  { %3008 = vmatprep.subr.bf16.mxu0 %v3362_v1  ;;  %3001 = vmatpush3.bf16.msra.mxu1 %v1030_v37 }
 0x954   :  { %3014 = vmatprep.subr.bf16.mxu1 %v3362_v1 }
 0x956   :  { %3009 = vmatpush3.bf16.msra.mxu0 %v3235_v35  ;;  %v1110_v35 = vsub.s32 4, %v3450_v7 }
 0x957   :  { %3034 = vmatprep.subr.bf16.mxu0 %v3362_v1 }
 0xa0d   :  { %v938_v38 = vpop.f32.mrf.mxu1 }
 0xa0f   :  { %v2990_v39 = vpop.f32.mrf.mxu1 }
 0xa10   :  { %v1116_v39 = vsub.s32 5, %v3450_v7 }
 0xa11   :  { %v941_v40 = vpop.f32.mrf.mxu1  ;;  %v986_v41 = vpop.f32.mrf.mxu0 }
 0xa12   :  { %v3210_v42 = vpack.i.bf16 %v986_v41, %v938_v38  ;;  %v1111_v38 = vrot.slane %v3456_v9, %v1110_v35 }
 0xa13   :  { %v2991_v43 = vpop.f32.mrf.mxu1  ;;  %v2996_v44 = vpop.f32.mrf.mxu0 }
 0xa14   :  { %3211 = vrot.lane.b32.xlu1 %v3210_v42, %s3378_s24  ;;  %v1117_v43 = vrot.slane %v3456_v9, %v1116_v39 }
 0xa15   :  { %v989_v45 = vpop.f32.mrf.mxu0 }
 0xa17   :  { %v2997_v46 = vpop.f32.mrf.mxu0 }
 0xa86   :  { %v3212_v52 = vpop.permute.xlu1 %3211 }
 0xa87   :  { %v3214_v58 = vunpack.i.h.bf16 %v3212_v52  ;;  %v3213_v59 = vunpack.i.l.bf16 %v3212_v52  ;;  %v1124_v52 = vrot.slane %v3456_v9, %v1123_v51 }
 0xa89   :  { %v1023_v63 = vsel %vm1021_vm5, %v1020_v60, %v3214_v58  ;;  %v1022_v6 = vsel %vm1021_vm5, %v1019_v62, %v3213_v59 }
 0xa8a   :  { %v1024_v10 = vpack.c.bf16 %v1023_v63, %v1022_v6 }
 0xa8c   :  { %3003 = vmatmul.mubr.msk.bf16.vlgmr.msra.gmra.mxu1 %vm65_vm1, %v1024_v10 }
 0xa8d   :  { %3030 = vmatprep.mubr.msk.bf16.mxu1 %vm3363_vm0, %v3362_v1 }
 0xb4c   :  { %v1072_v11 = vpop.f32.mrf.mxu1 }
 0xb4d   :  { %v1073_v12 = vadd.f32 %v1072_v11, %v1028_v61 }
 0xb4e   :  { %v3004_v13 = vpop.f32.mrf.mxu1 }
 0xb4f   :  { %v1079_v15 = vadd.f32 %v1073_v12, %v3432_v3 }
 0xb50   :  { %v1075_v16 = vpop.f32.mrf.mxu1 }
 0xb51   :  { %v1076_v17 = vadd.f32 %v1075_v16, %v1028_v61  ;;  %v1081_v19 = vsel %vm65_vm1, %v1079_v15, 0.0  ;;  %v1182_v61 = vsub.s32 3, %v3450_v7 }
 0xb52   :  { %1082 = vadd.xlane.f32.xlu1 %v1081_v19  ;;  %v3005_v20 = vpop.f32.mrf.mxu1 }
 0xb53   :  { %v1080_v21 = vadd.f32 %v1076_v17, %v3439_v4  ;;  %v3236_v4 = vld [vmem:[%s4024_s2 + $0x38] sm:$0xff]   ;;  %v1183_v11 = vrot.slane %v3456_v9, %v1182_v61 }
 0xb54   :  { %3015 = vmatpush3.bf16.msra.mxu1 %v3236_v4 }
 0xb55   :  { %v1084_v22 = vsel %vm65_vm1, %v1080_v21, 0.0  ;;  %3016 = vmatprep.subr.bf16.mxu1 %v3362_v1 }
 0xb56   :  { %1085 = vadd.xlane.f32.xlu0 %v1084_v22 }
 0xb58   :  { %3017 = vmatpush3.bf16.msra.mxu1 %v3237_v27  ;;  %v3718_v27 = vld [vmem:[%s4023_s1 + $0x30] ss:$8 sps:$4 sm:$0xff]  }
 0xb59   :  { %3018 = vmatprep.subr.bf16.mxu1 %v3362_v1 }
 0xb5c   :  { %3019 = vmatpush3.bf16.msra.mxu1 %v3238_v28  ;;  %v3724_v28 = vld [vmem:[%s4023_s1 + $0x20] ss:$8 sps:$4 sm:$0xff]  }
 0xb5d   :  { %3020 = vmatprep.subr.bf16.mxu1 %v3362_v1 }
 0xb60   :  { %3021 = vmatpush3.bf16.msra.mxu1 %v3239_v29 }
 0xb61   :  { %3022 = vmatprep.subr.bf16.mxu1 %v3362_v1 }
 0xb64   :  { %3023 = vmatpush3.bf16.msra.mxu1 %v3240_v30 }
 0xb65   :  { %3024 = vmatprep.subr.bf16.mxu1 %v3362_v1 }
 0xb68   :  { %3025 = vmatpush3.bf16.msra.mxu1 %v3241_v48  ;;  %v3749_v48 = vld [vmem:[%s4025_s3 + $0x8] sm:$0xff] }
 0xb69   :  { %3026 = vmatprep.subr.bf16.mxu1 %v3362_v1 }
 0xb6c   :  { %3027 = vmatpush3.bf16.msra.mxu1 %v3242_v49 }
 0xb6d   :  { %3028 = vmatprep.subr.bf16.mxu1 %v3362_v1 }
 0xb70   :  { %3029 = vmatpush3.bf16.msra.mxu1 %v3243_v50 }
 0xb71   :  { %3060 = vmatprep.subr.bf16.mxu1 %v3362_v1 }
 0xbdb   :  { %v1083_v23 = vpop.xlane.xlu1 %1082 }
 0xbdc   :  { %v1088_v24 = vmul.f32 0.03125, %v1083_v23 }
 0xbde   :  { %v1090_v14 = vsub.f32 %v1079_v15, %v1088_v24 }
 0xbdf   :  { %v1086_v0 = vpop.xlane.xlu0 %1085 }
 0xbe0   :  { %v1089_v25 = vmul.f32 0.03125, %v1086_v0  ;;  %v1092_v53 = vmul.f32 %v1090_v14, %v1090_v14 }
 0xbe2   :  { %v1091_v56 = vsub.f32 %v1080_v21, %v1089_v25  ;;  %v1094_v3 = vsel %vm65_vm1, %v1092_v53, 0.0 }
 0xbe3   :  { %1095 = vadd.xlane.f32.xlu0 %v1094_v3 }
 0xbe4   :  { %v1093_v57 = vmul.f32 %v1091_v56, %v1091_v56 }
 0xbe6   :  { %v1097_v26 = vsel %vm65_vm1, %v1093_v57, 0.0 }
 0xbe7   :  { %1098 = vadd.xlane.f32.xlu1 %v1097_v26 }
 0xc6c   :  { %v1096_v31 = vpop.xlane.xlu0 %1095 }
 0xc6d   :  { %v1100_v18 = vmul.f32 0.03125, %v1096_v31 }
 0xc6f   :  { %v1102_v32 = vadd.f32 1e-05, %v1100_v18 }
 0xc70   :  { %v1099_v33 = vpop.xlane.xlu1 %1098 }
 0xc71   :  { %3292 = vrsqrt.f32 %v1102_v32  ;;  %v1101_v2 = vmul.f32 0.03125, %v1099_v33 }
 0xc73   :  { %v1103_v34 = vadd.f32 1e-05, %v1101_v2  ;;  %v1303_v2 = vsub.s32 6, %v3450_v7 }
 0xc75   :  { %3294 = vrsqrt.f32 %v1103_v34 }
 0xc7e   :  { %v3293_v36 = vpop.eup %3292 }
 0xc7f   :  { %v1106_v37 = vmul.f32 %v3293_v36, %v1090_v14 }
 0xc81   :  { %v1112_v42 = vmul.f32 %v1111_v38, %v1106_v37  ;;  %v1304_v37 = vrot.slane %v3456_v9, %v1303_v2 }
 0xc82   :  { %v3295_v40 = vpop.eup %3294 }
 0xc83   :  { %v1107_v41 = vmul.f32 %v3295_v40, %v1091_v56  ;;  %v1118_v45 = vadd.f32 %v1117_v43, %v1112_v42 }
 0xc85   :  { %v1113_v44 = vmul.f32 %v1111_v38, %v1107_v41  ;;  %v1309_v38 = vsub.s32 7, %v3450_v7 }
 0xc87   :  { %v1119_v46 = vadd.f32 %v1117_v43, %v1113_v44  ;;  %v1310_v43 = vrot.slane %v3456_v9, %v1309_v38  ;;  %v1341_v9 = vrot.slane %v3749_v48, %v51_v8 }
 0xc89   :  { %v1120_v47 = vpack.c.bf16 %v1119_v46, %v1118_v45 }
 0xc8b   :  { %3011 = vmatmul.mubr.msk.bf16.vlgmr.msra.gmra.mxu0 %vm65_vm1, %v1120_v47 }
 0xc8c   :  { %3038 = vmatprep.mubr.msk.bf16.mxu0 %vm3363_vm0, %v3362_v1  ;;  %3035 = vmatpush3.bf16.msra.mxu0 %v3718_v27 }
 0xc8d   :  { %3036 = vmatprep.subr.bf16.mxu0 %v3362_v1 }
 0xc90   :  { %3037 = vmatpush3.bf16.msra.mxu0 %v3724_v28 }
 0xc91   :  { %3042 = vmatprep.subr.bf16.mxu0 %v3362_v1 }
 0xd4b   :  { %v1170_v54 = vpop.f32.mrf.mxu0 }
 0xd4c   :  { %v1171_v58 = vadd.f32 %v1170_v54, %v1124_v52 }
 0xd4d   :  { %v3012_v55 = vpop.f32.mrf.mxu0 }
 0xd4e   :  { %v1177_v63 = vmax.f32 %v1171_v58, 0.0 }
 0xd4f   :  { %v1173_v59 = vpop.f32.mrf.mxu0 }
 0xd50   :  { %v1174_v60 = vadd.f32 %v1173_v59, %v1124_v52 }
 0xd51   :  { %v3013_v62 = vpop.f32.mrf.mxu0 }
 0xd52   :  { %v1178_v6 = vmax.f32 %v1174_v60, 0.0 }
 0xd54   :  { %v1179_v10 = vpack.c.bf16 %v1178_v6, %v1177_v63 }
 0xd56   :  { %3031 = vmatmul.mubr.bf16.vlgmr.msra.gmra.mxu1 %v1179_v10 }
 0xd57   :  { %3062 = vmatprep.mubr.msk.bf16.mxu1 %vm3363_vm0, %v3362_v1 }
 0xe16   :  { %v1266_v12 = vpop.f32.mrf.mxu1 }
 0xe17   :  { %v1267_v13 = vadd.f32 %v1266_v12, %v1183_v11 }
 0xe18   :  { %v3032_v15 = vpop.f32.mrf.mxu1 }
 0xe19   :  { %v1273_v16 = vadd.f32 %v1267_v13, %v1118_v45 }
 0xe1a   :  { %v1269_v17 = vpop.f32.mrf.mxu1 }
 0xe1b   :  { %v1270_v19 = vadd.f32 %v1269_v17, %v1183_v11  ;;  %v1275_v20 = vsel %vm65_vm1, %v1273_v16, 0.0 }
 0xe1c   :  { %1276 = vadd.xlane.f32.xlu0 %v1275_v20  ;;  %v3033_v21 = vpop.f32.mrf.mxu1 }
 0xe1d   :  { %v1274_v22 = vadd.f32 %v1270_v19, %v1119_v46 }
 0xe1f   :  { %v1278_v23 = vsel %vm65_vm1, %v1274_v22, 0.0 }
 0xe20   :  { %1279 = vadd.xlane.f32.xlu1 %v1278_v23 }
 0xea5   :  { %v1277_v24 = vpop.xlane.xlu0 %1276 }
 0xea6   :  { %v1281_v14 = vmul.f32 0.03125, %v1277_v24 }
 0xea8   :  { %v1283_v0 = vsub.f32 %v1273_v16, %v1281_v14 }
 0xea9   :  { %v1280_v25 = vpop.xlane.xlu1 %1279 }
 0xeaa   :  { %v1282_v53 = vmul.f32 0.03125, %v1280_v25  ;;  %v1285_v56 = vmul.f32 %v1283_v0, %v1283_v0 }
 0xeac   :  { %v1284_v3 = vsub.f32 %v1274_v22, %v1282_v53  ;;  %v1287_v57 = vsel %vm65_vm1, %v1285_v56, 0.0 }
 0xead   :  { %1288 = vadd.xlane.f32.xlu0 %v1287_v57 }
 0xeae   :  { %v1286_v26 = vmul.f32 %v1284_v3, %v1284_v3 }
 0xeb0   :  { %v1290_v4 = vsel %vm65_vm1, %v1286_v26, 0.0 }
 0xeb1   :  { %1291 = vadd.xlane.f32.xlu1 %v1290_v4 }
 0xf36   :  { %v1289_v29 = vpop.xlane.xlu0 %1288 }
 0xf37   :  { %v1293_v30 = vmul.f32 0.03125, %v1289_v29 }
 0xf39   :  { %v1295_v31 = vadd.f32 1e-05, %v1293_v30 }
 0xf3a   :  { %v1292_v18 = vpop.xlane.xlu1 %1291 }
 0xf3b   :  { %3296 = vrsqrt.f32 %v1295_v31  ;;  %v1294_v32 = vmul.f32 0.03125, %v1292_v18 }
 0xf3d   :  { %v1296_v33 = vadd.f32 1e-05, %v1294_v32 }
 0xf3f   :  { %3298 = vrsqrt.f32 %v1296_v33 }
 0xf48   :  { %v3297_v34 = vpop.eup %3296 }
 0xf49   :  { %v1299_v36 = vmul.f32 %v3297_v34, %v1283_v0 }
 0xf4b   :  { %v1305_v42 = vmul.f32 %v1304_v37, %v1299_v36 }
 0xf4c   :  { %v3299_v40 = vpop.eup %3298 }
 0xf4d   :  { %v1300_v41 = vmul.f32 %v3299_v40, %v1284_v3  ;;  %v3737_v45 = vadd.f32 %v1310_v43, %v1305_v42 }
 0xf4f   :  { %v1306_v44 = vmul.f32 %v1304_v37, %v1300_v41 }
 0xf51   :  { %v3739_v46 = vadd.f32 %v1310_v43, %v1306_v44 }
 0xf53   :  { %v1337_v47 = vpack.c.bf16 %v3739_v46, %v3737_v45 }
 0xf55   :  { %3039 = vmatmul.mubr.msk.bf16.vlgmr.msra.gmra.mxu0 %vm65_vm1, %v1337_v47 }
 0xf56   :  { %3044 = vmatprep.mubr.msk.bf16.mxu0 %vm3363_vm0, %v3362_v1 }
0x1015   :  { %v1391_v49 = vpop.f32.mrf.mxu0 }
0x1016   :  { %v1392_v50 = vadd.f32 %v1391_v49, %v1341_v9 }
0x1017   :  { %v3040_v52 = vpop.f32.mrf.mxu0 }
0x1018   :  { %v3754_v54 = vpack.c.bf16 %v1392_v50, %v1392_v50 }
0x1019   :  { %v1394_v55 = vpop.f32.mrf.mxu0 }
0x101a   :  { %v1395_v58 = vadd.f32 %v1394_v55, %v1341_v9  ;;  %1401 = vrot.lane.b32.xlu0 %v3754_v54, %s3364_s30 }
0x101b   :  { %v3041_v59 = vpop.f32.mrf.mxu0 }
0x101c   :  { %v3758_v60 = vpack.c.bf16 %v1395_v58, %v1395_v58 }
0x101e   :  { %1450 = vrot.lane.b32.xlu1 %v3758_v60, %s3364_s30 }
0x108c   :  { %v1402_v62 = vpop.permute.xlu0 %1401 }
0x108d   :  { %v1407_v63 = vsel %vm115_vm2, %v1402_v62, 0 }
0x108e   :  { %3043 = vmatpush3.bf16.xpose.msra.mxu0 %v1407_v63 }
0x108f   :  { %3048 = vmatprep.subr.bf16.mxu0 %v3362_v1 }
0x1090   :  { %v1451_v8 = vpop.permute.xlu1 %1450 }
0x1091   :  { %v1456_v6 = vsel %vm115_vm2, %v1451_v8, 0 }
0x1095   :  { %3045 = vmatmul.mubr.msk.bf16.vlgmr.msra.gmra.mxu0 %vm115_vm2, %v3754_v54 }
0x1096   :  { %3049 = vmatpush3.bf16.xpose.msra.mxu0 %v1456_v6  ;;  %3050 = vmatprep.mubr.msk.bf16.mxu0 %vm3363_vm0, %v3362_v1 }
0x1097   :  { %3054 = vmatprep.subr.bf16.mxu0 %v3362_v1 }
0x109d   :  { %3051 = vmatmul.mubr.msk.bf16.vlgmr.msra.gmra.mxu0 %vm115_vm2, %v3758_v60 }
0x109e   :  { %3056 = vmatprep.mubr.msk.bf16.mxu0 %vm3363_vm0, %v3362_v1 }
0x1155   :  { %v1443_v10 = vpop.f32.mrf.mxu0 }
0x1156   :  { %v1498_v11 = vsel %vm115_vm2, %v1443_v10, -inf }
0x1157   :  { %1499 = vmax.xlane.f32.xlu1 %v1498_v11  ;;  %v3046_v12 = vpop.f32.mrf.mxu0 }
0x1159   :  { %v1446_v13 = vpop.f32.mrf.mxu0 }
0x115b   :  { %v3047_v15 = vpop.f32.mrf.mxu0 }
0x115d   :  { %v1492_v16 = vpop.f32.mrf.mxu0 }
0x115e   :  { %v1501_v17 = vsel %vm115_vm2, %v1492_v16, -inf }
0x115f   :  { %1502 = vmax.xlane.f32.xlu0 %v1501_v17  ;;  %v3052_v19 = vpop.f32.mrf.mxu0 }
0x1161   :  { %v1495_v20 = vpop.f32.mrf.mxu0 }
0x1163   :  { %v3053_v21 = vpop.f32.mrf.mxu0 }
0x1168   :  { %1570 = vrot.lane.b32.xlu1 %v3758_v60, %s3365_s7 }
0x1175   :  { %1522 = vrot.lane.b32.xlu0 %v3754_v54, %s3365_s7 }
0x11e0   :  { %v1500_v22 = vpop.xlane.xlu1 %1499 }
0x11e1   :  { %v1504_v23 = vsub.f32 %v1443_v10, %v1500_v22 }
0x11e3   :  { %v1506_v24 = vmul.f32 1.442695, %v1504_v23 }
0x11e4   :  { %v1571_v14 = vpop.permute.xlu1 %1570 }
0x11e5   :  { %3300 = vpow2.f32 %v1506_v24  ;;  %v1576_v0 = vsel %vm240_vm3, %v1571_v14, 0 }
0x11e6   :  { %3061 = vmatpush3.bf16.msra.mxu1 %v1576_v0 }
0x11e7   :  { %3072 = vmatprep.subr.bf16.mxu1 %v3362_v1 }
0x11e8   :  { %v1503_v25 = vpop.xlane.xlu0 %1502 }
0x11e9   :  { %v1505_v53 = vsub.f32 %v1492_v16, %v1503_v25 }
0x11eb   :  { %v1508_v56 = vmul.f32 1.442695, %v1505_v53 }
0x11ec   :  { %v1523_v3 = vpop.permute.xlu0 %1522 }
0x11ed   :  { %3302 = vpow2.f32 %v1508_v56  ;;  %v1528_v57 = vsel %vm240_vm3, %v1523_v3, 0 }
0x11ee   :  { %3055 = vmatpush3.bf16.msra.mxu0 %v1528_v57 }
0x11ef   :  { %3066 = vmatprep.subr.bf16.mxu0 %v3362_v1 }
0x11f2   :  { %v3301_v26 = vpop.eup %3300 }
0x11f3   :  { %v1510_v4 = vsel %vm115_vm2, %v3301_v26, 0.0 }
0x11f4   :  { %1511 = vadd.xlane.f32.xlu0 %v1510_v4 }
0x11fa   :  { %v3303_v29 = vpop.eup %3302 }
0x11fb   :  { %v1513_v30 = vsel %vm115_vm2, %v3303_v29, 0.0 }
0x11fc   :  { %1514 = vadd.xlane.f32.xlu1 %v1513_v30 }
0x120a   :  { %1670 = vrot.lane.b32.xlu0 %v3758_v60, %s3366_s8 }
0x120d   :  { %1620 = vrot.lane.b32.xlu1 %v3754_v54, %s3366_s8 }
0x120e   :  { %1668 = vrot.lane.b32.xlu0 %v3758_v60, %s3367_s9 }
0x1211   :  { %1618 = vrot.lane.b32.xlu1 %v3754_v54, %s3367_s9 }
0x127d   :  { %v1512_v31 = vpop.xlane.xlu0 %1511 }
0x127e   :  { %3304 = vrcp.f32 %v1512_v31 }
0x1281   :  { %v1671_v42 = vpop.permute.xlu0 %1670 }
0x1282   :  { %v1676_v47 = vsel %vm115_vm2, %v1671_v42, 0 }
0x1285   :  { %v1515_v18 = vpop.xlane.xlu1 %1514  ;;  %v1669_v9 = vpop.permute.xlu0 %1668 }
0x1286   :  { %3306 = vrcp.f32 %v1515_v18 }
0x1289   :  { %v1621_v34 = vpop.permute.xlu1 %1620 }
0x128a   :  { %v1626_v37 = vsel %vm115_vm2, %v1621_v34, 0 }
0x128b   :  { %v3305_v32 = vpop.eup %3304 }
0x128c   :  { %v1518_v33 = vmul.f32 %v3305_v32, %v3301_v26 }
0x128d   :  { %v1619_v44 = vpop.permute.xlu1 %1618 }
0x128e   :  { %v1520_v36 = vpack.c.bf16 %v1518_v33, %v1518_v33 }
0x1290   :  { %3057 = vmatmul.mubr.msk.bf16.vlgmr.msra.gmra.mxu0 %vm115_vm2, %v1520_v36 }
0x1291   :  { %3067 = vmatpush3.bf16.xpose.msra.mxu0 %v1626_v37  ;;  %3068 = vmatprep.mubr.msk.bf16.mxu0 %vm3363_vm0, %v3362_v1 }
0x1292   :  { %3078 = vmatprep.subr.bf16.mxu0 %v3362_v1 }
0x1293   :  { %v3307_v40 = vpop.eup %3306 }
0x1294   :  { %v1519_v41 = vmul.f32 %v3307_v40, %v3303_v29 }
0x1296   :  { %v1521_v43 = vpack.c.bf16 %v1519_v41, %v1519_v41 }
0x1298   :  { %3063 = vmatmul.mubr.msk.bf16.vlgmr.msra.gmra.mxu1 %vm115_vm2, %v1521_v43  ;;  %3069 = vmatmul.mubr.msk.bf16.vlgmr.msra.gmra.mxu0 %vm115_vm2, %v1619_v44 }
0x1299   :  { %3073 = vmatpush3.bf16.xpose.msra.mxu1 %v1676_v47  ;;  %3074 = vmatprep.mubr.msk.bf16.mxu1 %vm3363_vm0, %v3362_v1 }
0x129a   :  { %3084 = vmatprep.subr.bf16.mxu1 %v3362_v1  ;;  %3080 = vmatprep.mubr.msk.bf16.mxu0 %vm3363_vm0, %v3362_v1 }
0x12a0   :  { %3075 = vmatmul.mubr.msk.bf16.vlgmr.msra.gmra.mxu1 %vm115_vm2, %v1669_v9 }
0x12a1   :  { %3086 = vmatprep.mubr.msk.bf16.mxu1 %vm3363_vm0, %v3362_v1 }
0x1350   :  { %v3810_v49 = vpop.f32.mrf.mxu0 }
0x1352   :  { %v3058_v50 = vpop.f32.mrf.mxu0 }
0x1354   :  { %v1567_v52 = vpop.f32.mrf.mxu0 }
0x1356   :  { %v3059_v55 = vpop.f32.mrf.mxu0 }
0x1358   :  { %v3812_v58 = vpop.f32.mrf.mxu1  ;;  %v1662_v59 = vpop.f32.mrf.mxu0 }
0x1359   :  { %v1718_v62 = vsel %vm115_vm2, %v1662_v59, -inf }
0x135a   :  { %1719 = vmax.xlane.f32.xlu1 %v1718_v62  ;;  %v3064_v63 = vpop.f32.mrf.mxu1  ;;  %v3070_v8 = vpop.f32.mrf.mxu0 }
0x135c   :  { %v1615_v6 = vpop.f32.mrf.mxu1  ;;  %v1665_v10 = vpop.f32.mrf.mxu0 }
0x135e   :  { %v3065_v11 = vpop.f32.mrf.mxu1  ;;  %v3071_v12 = vpop.f32.mrf.mxu0 }
0x1360   :  { %v1712_v13 = vpop.f32.mrf.mxu1 }
0x1361   :  { %v1721_v15 = vsel %vm115_vm2, %v1712_v13, -inf }
0x1362   :  { %1722 = vmax.xlane.f32.xlu0 %v1721_v15  ;;  %v3076_v16 = vpop.f32.mrf.mxu1 }
0x1364   :  { %v1715_v17 = vpop.f32.mrf.mxu1 }
0x1366   :  { %v3077_v19 = vpop.f32.mrf.mxu1 }
0x136b   :  { %1790 = vrot.lane.b32.xlu1 %v3758_v60, %s3368_s10 }
0x1378   :  { %1742 = vrot.lane.b32.xlu0 %v3754_v54, %s3368_s10 }
0x13e3   :  { %v1720_v20 = vpop.xlane.xlu1 %1719 }
0x13e4   :  { %v1724_v21 = vsub.f32 %v1662_v59, %v1720_v20 }
0x13e6   :  { %v1726_v22 = vmul.f32 1.442695, %v1724_v21 }
0x13e7   :  { %v1791_v23 = vpop.permute.xlu1 %1790 }
0x13e8   :  { %3308 = vpow2.f32 %v1726_v22  ;;  %v1796_v24 = vsel %vm240_vm3, %v1791_v23, 0 }
0x13e9   :  { %3085 = vmatpush3.bf16.msra.mxu1 %v1796_v24 }
0x13ea   :  { %3096 = vmatprep.subr.bf16.mxu1 %v3362_v1 }
0x13eb   :  { %v1723_v14 = vpop.xlane.xlu0 %1722 }
0x13ec   :  { %v1725_v0 = vsub.f32 %v1712_v13, %v1723_v14 }
0x13ee   :  { %v1728_v25 = vmul.f32 1.442695, %v1725_v0 }
0x13ef   :  { %v1743_v53 = vpop.permute.xlu0 %1742 }
0x13f0   :  { %3310 = vpow2.f32 %v1728_v25  ;;  %v1748_v56 = vsel %vm240_vm3, %v1743_v53, 0 }
0x13f1   :  { %3079 = vmatpush3.bf16.msra.mxu0 %v1748_v56 }
0x13f2   :  { %3090 = vmatprep.subr.bf16.mxu0 %v3362_v1 }
0x13f5   :  { %v3309_v3 = vpop.eup %3308 }
0x13f6   :  { %v1730_v57 = vsel %vm115_vm2, %v3309_v3, 0.0 }
0x13f7   :  { %1731 = vadd.xlane.f32.xlu0 %v1730_v57 }
0x13fd   :  { %v3311_v26 = vpop.eup %3310 }
0x13fe   :  { %v1733_v4 = vsel %vm115_vm2, %v3311_v26, 0.0 }
0x13ff   :  { %1734 = vadd.xlane.f32.xlu1 %v1733_v4 }
0x140d   :  { %1890 = vrot.lane.b32.xlu0 %v3758_v60, %s3369_s11 }
0x1410   :  { %1840 = vrot.lane.b32.xlu1 %v3754_v54, %s3369_s11 }
0x1411   :  { %1888 = vrot.lane.b32.xlu0 %v3758_v60, %s3370_s12 }
0x1414   :  { %1838 = vrot.lane.b32.xlu1 %v3754_v54, %s3370_s12 }
0x1480   :  { %v1732_v29 = vpop.xlane.xlu0 %1731 }
0x1481   :  { %3312 = vrcp.f32 %v1732_v29 }
0x1484   :  { %v1891_v40 = vpop.permute.xlu0 %1890 }
0x1485   :  { %v1896_v43 = vsel %vm115_vm2, %v1891_v40, 0 }
0x1488   :  { %v1735_v30 = vpop.xlane.xlu1 %1734  ;;  %v1889_v44 = vpop.permute.xlu0 %1888 }
0x1489   :  { %3314 = vrcp.f32 %v1735_v30 }
0x148c   :  { %v1841_v32 = vpop.permute.xlu1 %1840 }
0x148d   :  { %v1846_v34 = vsel %vm115_vm2, %v1841_v32, 0 }
0x148e   :  { %v3313_v31 = vpop.eup %3312 }
0x148f   :  { %v1738_v18 = vmul.f32 %v3313_v31, %v3309_v3 }
0x1490   :  { %v1839_v42 = vpop.permute.xlu1 %1838 }
0x1491   :  { %v1740_v33 = vpack.c.bf16 %v1738_v18, %v1738_v18 }
0x1493   :  { %3081 = vmatmul.mubr.msk.bf16.vlgmr.msra.gmra.mxu0 %vm115_vm2, %v1740_v33 }
0x1494   :  { %3091 = vmatpush3.bf16.xpose.msra.mxu0 %v1846_v34  ;;  %3092 = vmatprep.mubr.msk.bf16.mxu0 %vm3363_vm0, %v3362_v1 }
0x1495   :  { %3102 = vmatprep.subr.bf16.mxu0 %v3362_v1 }
0x1496   :  { %v3315_v36 = vpop.eup %3314 }
0x1497   :  { %v1739_v37 = vmul.f32 %v3315_v36, %v3311_v26 }
0x1499   :  { %v1741_v41 = vpack.c.bf16 %v1739_v37, %v1739_v37 }
0x149b   :  { %3087 = vmatmul.mubr.msk.bf16.vlgmr.msra.gmra.mxu1 %vm115_vm2, %v1741_v41  ;;  %3093 = vmatmul.mubr.msk.bf16.vlgmr.msra.gmra.mxu0 %vm115_vm2, %v1839_v42 }
0x149c   :  { %3097 = vmatpush3.bf16.xpose.msra.mxu1 %v1896_v43  ;;  %3098 = vmatprep.mubr.msk.bf16.mxu1 %vm3363_vm0, %v3362_v1 }
0x149d   :  { %3108 = vmatprep.subr.bf16.mxu1 %v3362_v1  ;;  %3104 = vmatprep.mubr.msk.bf16.mxu0 %vm3363_vm0, %v3362_v1 }
0x14a3   :  { %3099 = vmatmul.mubr.msk.bf16.vlgmr.msra.gmra.mxu1 %vm115_vm2, %v1889_v44 }
0x14a4   :  { %3110 = vmatprep.mubr.msk.bf16.mxu1 %vm3363_vm0, %v3362_v1 }
0x1553   :  { %v3850_v47 = vpop.f32.mrf.mxu0 }
0x1555   :  { %v3082_v9 = vpop.f32.mrf.mxu0 }
0x1557   :  { %v1787_v50 = vpop.f32.mrf.mxu0 }
0x1559   :  { %v3083_v52 = vpop.f32.mrf.mxu0 }
0x155b   :  { %v3852_v55 = vpop.f32.mrf.mxu1  ;;  %v1882_v59 = vpop.f32.mrf.mxu0 }
0x155c   :  { %v3215_v62 = vpack.i.bf16 %v3852_v55, %v3850_v47  ;;  %v1938_v63 = vsel %vm115_vm2, %v1882_v59, -inf }
0x155d   :  { %1939 = vmax.xlane.f32.xlu1 %v1938_v63  ;;  %v3088_v8 = vpop.f32.mrf.mxu1  ;;  %v3094_v6 = vpop.f32.mrf.mxu0 }
0x155f   :  { %v1835_v10 = vpop.f32.mrf.mxu1  ;;  %v1885_v11 = vpop.f32.mrf.mxu0 }
0x1561   :  { %v3089_v12 = vpop.f32.mrf.mxu1  ;;  %v3095_v13 = vpop.f32.mrf.mxu0 }
0x1563   :  { %v1932_v15 = vpop.f32.mrf.mxu1 }
0x1564   :  { %v1941_v16 = vsel %vm115_vm2, %v1932_v15, -inf }
0x1565   :  { %1942 = vmax.xlane.f32.xlu0 %v1941_v16  ;;  %v3100_v17 = vpop.f32.mrf.mxu1 }
0x1567   :  { %v1935_v19 = vpop.f32.mrf.mxu1 }
0x1569   :  { %v3101_v20 = vpop.f32.mrf.mxu1 }
0x156e   :  { %2010 = vrot.lane.b32.xlu1 %v3758_v60, %s3371_s13 }
0x157b   :  { %1962 = vrot.lane.b32.xlu0 %v3754_v54, %s3371_s13 }
0x15e6   :  { %v1940_v21 = vpop.xlane.xlu1 %1939 }
0x15e7   :  { %v1944_v22 = vsub.f32 %v1882_v59, %v1940_v21 }
0x15e9   :  { %v1946_v23 = vmul.f32 1.442695, %v1944_v22 }
0x15ea   :  { %v2011_v24 = vpop.permute.xlu1 %2010 }
0x15eb   :  { %3316 = vpow2.f32 %v1946_v23  ;;  %v2016_v14 = vsel %vm240_vm3, %v2011_v24, 0 }
0x15ec   :  { %3109 = vmatpush3.bf16.msra.mxu1 %v2016_v14 }
0x15ed   :  { %3120 = vmatprep.subr.bf16.mxu1 %v3362_v1 }
0x15ee   :  { %v1943_v0 = vpop.xlane.xlu0 %1942 }
0x15ef   :  { %v1945_v25 = vsub.f32 %v1932_v15, %v1943_v0 }
0x15f1   :  { %v1948_v53 = vmul.f32 1.442695, %v1945_v25 }
0x15f2   :  { %v1963_v56 = vpop.permute.xlu0 %1962 }
0x15f3   :  { %3318 = vpow2.f32 %v1948_v53  ;;  %v1968_v3 = vsel %vm240_vm3, %v1963_v56, 0 }
0x15f4   :  { %3103 = vmatpush3.bf16.msra.mxu0 %v1968_v3 }
0x15f5   :  { %3114 = vmatprep.subr.bf16.mxu0 %v3362_v1 }
0x15f8   :  { %v3317_v57 = vpop.eup %3316 }
0x15f9   :  { %v1950_v26 = vsel %vm115_vm2, %v3317_v57, 0.0 }
0x15fa   :  { %1951 = vadd.xlane.f32.xlu0 %v1950_v26 }
0x1600   :  { %v3319_v4 = vpop.eup %3318 }
0x1601   :  { %v1953_v29 = vsel %vm115_vm2, %v3319_v4, 0.0 }
0x1602   :  { %1954 = vadd.xlane.f32.xlu1 %v1953_v29 }
0x1610   :  { %2110 = vrot.lane.b32.xlu0 %v3758_v60, %s3372_s14 }
0x1613   :  { %2060 = vrot.lane.b32.xlu1 %v3754_v54, %s3372_s14 }
0x1614   :  { %2108 = vrot.lane.b32.xlu0 %v3758_v60, %s3373_s15 }
0x1617   :  { %2058 = vrot.lane.b32.xlu1 %v3754_v54, %s3373_s15 }
0x1683   :  { %v1952_v30 = vpop.xlane.xlu0 %1951 }
0x1684   :  { %3320 = vrcp.f32 %v1952_v30 }
0x1687   :  { %v2111_v41 = vpop.permute.xlu0 %2110 }
0x1688   :  { %v2116_v44 = vsel %vm115_vm2, %v2111_v41, 0 }
0x168b   :  { %v1955_v31 = vpop.xlane.xlu1 %1954  ;;  %v2109_v9 = vpop.permute.xlu0 %2108 }
0x168c   :  { %3322 = vrcp.f32 %v1955_v31 }
0x168f   :  { %v2061_v33 = vpop.permute.xlu1 %2060 }
0x1690   :  { %v2066_v36 = vsel %vm115_vm2, %v2061_v33, 0 }
0x1691   :  { %v3321_v18 = vpop.eup %3320 }
0x1692   :  { %v1958_v32 = vmul.f32 %v3321_v18, %v3317_v57 }
0x1693   :  { %v2059_v43 = vpop.permute.xlu1 %2058 }
0x1694   :  { %v1960_v34 = vpack.c.bf16 %v1958_v32, %v1958_v32 }
0x1696   :  { %3105 = vmatmul.mubr.msk.bf16.vlgmr.msra.gmra.mxu0 %vm115_vm2, %v1960_v34 }
0x1697   :  { %3115 = vmatpush3.bf16.xpose.msra.mxu0 %v2066_v36  ;;  %3116 = vmatprep.mubr.msk.bf16.mxu0 %vm3363_vm0, %v3362_v1 }
0x1698   :  { %3126 = vmatprep.subr.bf16.mxu0 %v3362_v1 }
0x1699   :  { %v3323_v37 = vpop.eup %3322 }
0x169a   :  { %v1959_v40 = vmul.f32 %v3323_v37, %v3319_v4 }
0x169c   :  { %v1961_v42 = vpack.c.bf16 %v1959_v40, %v1959_v40 }
0x169e   :  { %3111 = vmatmul.mubr.msk.bf16.vlgmr.msra.gmra.mxu1 %vm115_vm2, %v1961_v42  ;;  %3117 = vmatmul.mubr.msk.bf16.vlgmr.msra.gmra.mxu0 %vm115_vm2, %v2059_v43 }
0x169f   :  { %3121 = vmatpush3.bf16.xpose.msra.mxu1 %v2116_v44  ;;  %3122 = vmatprep.mubr.msk.bf16.mxu1 %vm3363_vm0, %v3362_v1 }
0x16a0   :  { %3132 = vmatprep.subr.bf16.mxu1 %v3362_v1  ;;  %3128 = vmatprep.mubr.msk.bf16.mxu0 %vm3363_vm0, %v3362_v1 }
0x16a6   :  { %3123 = vmatmul.mubr.msk.bf16.vlgmr.msra.gmra.mxu1 %vm115_vm2, %v2109_v9 }
0x16a7   :  { %3134 = vmatprep.mubr.msk.bf16.mxu1 %vm3363_vm0, %v3362_v1 }
0x1756   :  { %v2004_v50 = vpop.f32.mrf.mxu0 }
0x1758   :  { %v3106_v52 = vpop.f32.mrf.mxu0 }
0x175a   :  { %v2007_v59 = vpop.f32.mrf.mxu0 }
0x175c   :  { %v3107_v63 = vpop.f32.mrf.mxu0 }
0x175e   :  { %v2052_v8 = vpop.f32.mrf.mxu1  ;;  %v2102_v6 = vpop.f32.mrf.mxu0 }
0x175f   :  { %v3220_v10 = vpack.i.bf16 %v2052_v8, %v2004_v50  ;;  %v2158_v11 = vsel %vm115_vm2, %v2102_v6, -inf }
0x1760   :  { %2159 = vmax.xlane.f32.xlu1 %v2158_v11  ;;  %v3112_v12 = vpop.f32.mrf.mxu1  ;;  %v3118_v13 = vpop.f32.mrf.mxu0 }
0x1762   :  { %v2055_v15 = vpop.f32.mrf.mxu1  ;;  %v2105_v16 = vpop.f32.mrf.mxu0 }
0x1764   :  { %v3113_v17 = vpop.f32.mrf.mxu1  ;;  %v3119_v19 = vpop.f32.mrf.mxu0 }
0x1766   :  { %v2152_v20 = vpop.f32.mrf.mxu1 }
0x1767   :  { %v2161_v21 = vsel %vm115_vm2, %v2152_v20, -inf }
0x1768   :  { %2162 = vmax.xlane.f32.xlu0 %v2161_v21  ;;  %v3124_v22 = vpop.f32.mrf.mxu1 }
0x176a   :  { %v2155_v23 = vpop.f32.mrf.mxu1 }
0x176c   :  { %v3125_v24 = vpop.f32.mrf.mxu1 }
0x17e9   :  { %v2160_v14 = vpop.xlane.xlu1 %2159 }
0x17ea   :  { %v2164_v0 = vsub.f32 %v2102_v6, %v2160_v14 }
0x17ec   :  { %v2166_v25 = vmul.f32 1.442695, %v2164_v0 }
0x17ee   :  { %3324 = vpow2.f32 %v2166_v25 }
0x17f1   :  { %v2163_v53 = vpop.xlane.xlu0 %2162 }
0x17f2   :  { %v2165_v56 = vsub.f32 %v2152_v20, %v2163_v53 }
0x17f4   :  { %v2168_v3 = vmul.f32 1.442695, %v2165_v56 }
0x17f6   :  { %3326 = vpow2.f32 %v2168_v3 }
0x17fb   :  { %v3325_v57 = vpop.eup %3324 }
0x17fc   :  { %v2170_v26 = vsel %vm115_vm2, %v3325_v57, 0.0 }
0x17fd   :  { %2171 = vadd.xlane.f32.xlu0 %v2170_v26 }
0x1803   :  { %v3327_v4 = vpop.eup %3326 }
0x1804   :  { %v2173_v29 = vsel %vm115_vm2, %v3327_v4, 0.0 }
0x1805   :  { %2174 = vadd.xlane.f32.xlu1 %v2173_v29 }
0x1813   :  { %2182 = vrot.lane.b32.xlu0 %v3754_v54, %s3374_s16 }
0x1816   :  { %2230 = vrot.lane.b32.xlu1 %v3758_v60, %s3374_s16 }
0x1817   :  { %3216 = vrot.lane.b32.xlu0 %v3215_v62, %s3376_s18 }
0x181a   :  { %2315 = vrot.lane.b32.xlu1 %v3718_v27, %s3375_s17 }
0x181e   :  { %3221 = vrot.lane.b32.xlu1 %v3220_v10, %s3377_s19 }
0x1822   :  { %2313 = vrot.lane.b32.xlu1 %v3724_v28, %s3375_s17 }
0x1886   :  { %v2172_v30 = vpop.xlane.xlu0 %2171 }
0x1887   :  { %3328 = vrcp.f32 %v2172_v30 }
0x188a   :  { %v2183_v31 = vpop.permute.xlu0 %2182 }
0x188b   :  { %v2188_v54 = vsel %vm240_vm3, %v2183_v31, 0 }
0x188c   :  { %3127 = vmatpush3.bf16.msra.mxu0 %v2188_v54 }
0x188d   :  { %3138 = vmatprep.subr.bf16.mxu0 %v3362_v1 }
0x188e   :  { %v2175_v60 = vpop.xlane.xlu1 %2174  ;;  %v3217_v63 = vpop.permute.xlu0 %3216 }
0x188f   :  { %3330 = vrcp.f32 %v2175_v60  ;;  %v3219_v8 = vunpack.i.h.bf16 %v3217_v63  ;;  %v3218_v6 = vunpack.i.l.bf16 %v3217_v63  ;;  %v2400_v63 = vrot.slane %v3749_v48, %v1116_v39  ;;  %v3256_v39 = vld [vmem:[%s4024_s2 + $0x48] sm:$0xff]  }
0x1891   :  { %v2303_v13 = vsel %vm115_vm2, %v3812_v58, %v3219_v8  ;;  %v2302_v15 = vsel %vm115_vm2, %v3810_v49, %v3218_v6  ;;  %v2312_v49 = vrot.slane %v3749_v48, %v1027_v5 }
0x1892   :  { %v2231_v47 = vpop.permute.xlu1 %2230 }
0x1893   :  { %v2236_v55 = vsel %vm240_vm3, %v2231_v47, 0 }
0x1894   :  { %v3329_v62 = vpop.eup %3328  ;;  %3133 = vmatpush3.bf16.msra.mxu1 %v2236_v55 }
0x1895   :  { %v2178_v27 = vmul.f32 %v3329_v62, %v3325_v57  ;;  %3146 = vmatprep.subr.bf16.mxu1 %v3362_v1  ;;  %v3249_v62 = vld [vmem:[%s4023_s1 + $0x24] ss:$8 sps:$4 sm:$0xff]  }
0x1896   :  { %v2316_v28 = vpop.permute.xlu1 %2315 }
0x1897   :  { %v2180_v18 = vpack.c.bf16 %v2178_v27, %v2178_v27  ;;  %v3250_v27 = vld [vmem:[%s4024_s2 + $0x78] sm:$0xff]  }
0x1899   :  { %3129 = vmatmul.mubr.msk.bf16.vlgmr.msra.gmra.mxu0 %vm115_vm2, %v2180_v18  ;;  %v3251_v18 = vld [vmem:[%s4024_s2 + $0x70] sm:$0xff]  }
0x189a   :  { %3139 = vmatpush3.bf16.msra.mxu0 %v2316_v28  ;;  %3142 = vmatprep.mubr.msk.bf16.mxu0 %vm3363_vm0, %v3362_v1  ;;  %v3222_v36 = vpop.permute.xlu1 %3221  ;;  %v3252_v28 = vld [vmem:[%s4024_s2 + $0x68] sm:$0xff]  }
0x189b   :  { %3140 = vmatprep.subr.bf16.mxu0 %v3362_v1  ;;  %v3224_v10 = vunpack.i.h.bf16 %v3222_v36  ;;  %v3223_v11 = vunpack.i.l.bf16 %v3222_v36 }
0x189c   :  { %v3331_v32 = vpop.eup %3330 }
0x189d   :  { %v2179_v33 = vmul.f32 %v3331_v32, %v3327_v4  ;;  %v2304_v19 = vsel %vm1018_vm4, %v2302_v15, %v3223_v11  ;;  %v2305_v20 = vsel %vm1018_vm4, %v2303_v13, %v3224_v10  ;;  %v3253_v32 = vld [vmem:[%s4024_s2 + $0x60] sm:$0xff]   ;;  %v2407_v13 = vrot.slane %v3749_v48, %v1123_v51 }
0x189e   :  { %v2314_v40 = vpop.permute.xlu1 %2313 }
0x189f   :  { %v2181_v34 = vpack.c.bf16 %v2179_v33, %v2179_v33  ;;  %3141 = vmatpush3.bf16.msra.mxu0 %v2314_v40  ;;  %v3254_v33 = vld [vmem:[%s4024_s2 + $0x58] sm:$0xff]  }
0x18a0   :  { %3154 = vmatprep.subr.bf16.mxu0 %v3362_v1 }
0x18a1   :  { %3135 = vmatmul.mubr.msk.bf16.vlgmr.msra.gmra.mxu1 %vm115_vm2, %v2181_v34 }
0x18a2   :  { %3150 = vmatprep.mubr.msk.bf16.mxu1 %vm3363_vm0, %v3362_v1 }
0x1959   :  { %v2224_v37 = vpop.f32.mrf.mxu0 }
0x195b   :  { %v3130_v41 = vpop.f32.mrf.mxu0 }
0x195d   :  { %v2227_v42 = vpop.f32.mrf.mxu0 }
0x195f   :  { %v3131_v43 = vpop.f32.mrf.mxu0 }
0x1961   :  { %v2272_v44 = vpop.f32.mrf.mxu1 }
0x1962   :  { %v3225_v9 = vpack.i.bf16 %v2272_v44, %v2224_v37 }
0x1963   :  { %v3136_v50 = vpop.f32.mrf.mxu1 }
0x1964   :  { %3226 = vrot.lane.b32.xlu0 %v3225_v9, %s3378_s24  ;;  %v2394_v9 = vrot.slane %v3749_v48, %v1110_v35  ;;  %v3255_v35 = vld [vmem:[%s4024_s2 + $0x50] sm:$0xff]  }
0x1965   :  { %v2275_v52 = vpop.f32.mrf.mxu1 }
0x1967   :  { %v3137_v59 = vpop.f32.mrf.mxu1 }
0x19d6   :  { %v3227_v12 = vpop.permute.xlu0 %3226 }
0x19d7   :  { %v3229_v16 = vunpack.i.h.bf16 %v3227_v12  ;;  %v3228_v17 = vunpack.i.l.bf16 %v3227_v12  ;;  %v3257_v12 = vld [vmem:[%s4024_s2 + $0x40] sm:$0xff]  }
0x19d9   :  { %v2307_v21 = vsel %vm1021_vm5, %v2305_v20, %v3229_v16  ;;  %v2306_v22 = vsel %vm1021_vm5, %v2304_v19, %v3228_v17 }
0x19da   :  { %v2308_v23 = vpack.c.bf16 %v2307_v21, %v2306_v22 }
0x19dc   :  { %3143 = vmatmul.mubr.msk.bf16.vlgmr.msra.gmra.mxu0 %vm65_vm1, %v2308_v23 }
0x19dd   :  { %3170 = vmatprep.mubr.msk.bf16.mxu0 %vm3363_vm0, %v3362_v1  ;;  %3155 = vmatpush3.bf16.msra.mxu0 %v3250_v27 }
0x19de   :  { %3156 = vmatprep.subr.bf16.mxu0 %v3362_v1 }
0x19e1   :  { %3157 = vmatpush3.bf16.msra.mxu0 %v3251_v18 }
0x19e2   :  { %3158 = vmatprep.subr.bf16.mxu0 %v3362_v1 }
0x19e5   :  { %3159 = vmatpush3.bf16.msra.mxu0 %v3252_v28 }
0x19e6   :  { %3160 = vmatprep.subr.bf16.mxu0 %v3362_v1 }
0x19e9   :  { %3161 = vmatpush3.bf16.msra.mxu0 %v3253_v32 }
0x19ea   :  { %3162 = vmatprep.subr.bf16.mxu0 %v3362_v1 }
0x19ed   :  { %3163 = vmatpush3.bf16.msra.mxu0 %v3254_v33 }
0x19ee   :  { %3164 = vmatprep.subr.bf16.mxu0 %v3362_v1 }
0x19f1   :  { %3165 = vmatpush3.bf16.msra.mxu0 %v3255_v35 }
0x19f2   :  { %3166 = vmatprep.subr.bf16.mxu0 %v3362_v1 }
0x19f5   :  { %3167 = vmatpush3.bf16.msra.mxu0 %v3256_v39 }
0x19f6   :  { %3168 = vmatprep.subr.bf16.mxu0 %v3362_v1 }
0x19f9   :  { %3169 = vmatpush3.bf16.msra.mxu0 %v3257_v12 }
0x1a9c   :  { %v2356_v58 = vpop.f32.mrf.mxu0 }
0x1a9d   :  { %v2357_v24 = vadd.f32 %v2356_v58, %v2312_v49  ;;  %v2466_v58 = vrot.slane %v3749_v48, %v1182_v61 }
0x1a9e   :  { %v3144_v14 = vpop.f32.mrf.mxu0 }
0x1a9f   :  { %v2363_v0 = vadd.f32 %v2357_v24, %v3737_v45 }
0x1aa0   :  { %v2359_v25 = vpop.f32.mrf.mxu0 }
0x1aa1   :  { %v2360_v53 = vadd.f32 %v2359_v25, %v2312_v49  ;;  %v2365_v56 = vsel %vm65_vm1, %v2363_v0, 0.0 }
0x1aa2   :  { %2366 = vadd.xlane.f32.xlu0 %v2365_v56  ;;  %v3145_v3 = vpop.f32.mrf.mxu0 }
0x1aa3   :  { %v2364_v57 = vadd.f32 %v2360_v53, %v3739_v46  ;;  %v3248_v46 = vld [vmem:[%s4023_s1 + $0x34] ss:$8 sps:$4 sm:$0xff]  }
0x1aa4   :  { %3147 = vmatpush3.bf16.msra.mxu1 %v3248_v46  ;;  %v3259_v46 = vld [vmem:[%s4026_s4] sm:$0xff]  }
0x1aa5   :  { %v2368_v26 = vsel %vm65_vm1, %v2364_v57, 0.0  ;;  %3148 = vmatprep.subr.bf16.mxu1 %v3362_v1 }
0x1aa6   :  { %2369 = vadd.xlane.f32.xlu1 %v2368_v26 }
0x1aa8   :  { %3149 = vmatpush3.bf16.msra.mxu1 %v3249_v62 }
0x1aa9   :  { %3174 = vmatprep.subr.bf16.mxu1 %v3362_v1 }
0x1b2b   :  { %v2367_v4 = vpop.xlane.xlu0 %2366 }
0x1b2c   :  { %v2371_v29 = vmul.f32 0.03125, %v2367_v4 }
0x1b2e   :  { %v2373_v30 = vsub.f32 %v2363_v0, %v2371_v29 }
0x1b2f   :  { %v2370_v5 = vpop.xlane.xlu1 %2369 }
0x1b30   :  { %v2372_v31 = vmul.f32 0.03125, %v2370_v5  ;;  %v2375_v54 = vmul.f32 %v2373_v30, %v2373_v30 }
0x1b32   :  { %v2374_v60 = vsub.f32 %v2364_v57, %v2372_v31  ;;  %v2377_v45 = vsel %vm65_vm1, %v2375_v54, 0.0 }
0x1b33   :  { %2378 = vadd.xlane.f32.xlu0 %v2377_v45 }
0x1b34   :  { %v2376_v47 = vmul.f32 %v2374_v60, %v2374_v60 }
0x1b36   :  { %v2380_v55 = vsel %vm65_vm1, %v2376_v47, 0.0 }
0x1b37   :  { %2381 = vadd.xlane.f32.xlu0 %v2380_v55  ;;  %v3258_v55 = vld [vmem:[%s4026_s4 + $0x8] sm:$0xff]  }
0x1bbc   :  { %v2379_v34 = vpop.xlane.xlu0 %2378 }
0x1bbd   :  { %v2383_v36 = vmul.f32 0.03125, %v2379_v34  ;;  %v2587_v34 = vrot.slane %v3749_v48, %v1303_v2 }
0x1bbf   :  { %v2385_v37 = vadd.f32 1e-05, %v2383_v36 }
0x1bc0   :  { %v2382_v40 = vpop.xlane.xlu0 %2381 }
0x1bc1   :  { %3332 = vrsqrt.f32 %v2385_v37  ;;  %v2384_v41 = vmul.f32 0.03125, %v2382_v40  ;;  %v2593_v37 = vrot.slane %v3749_v48, %v1309_v38 }
0x1bc3   :  { %v2386_v42 = vadd.f32 1e-05, %v2384_v41 }
0x1bc5   :  { %3334 = vrsqrt.f32 %v2386_v42 }
0x1bce   :  { %v3333_v43 = vpop.eup %3332 }
0x1bcf   :  { %v2389_v44 = vmul.f32 %v3333_v43, %v2373_v30 }
0x1bd1   :  { %v2395_v59 = vmul.f32 %v2394_v9, %v2389_v44 }
0x1bd2   :  { %v3335_v50 = vpop.eup %3334 }
0x1bd3   :  { %v2390_v52 = vmul.f32 %v3335_v50, %v2374_v60  ;;  %v2401_v6 = vadd.f32 %v2400_v63, %v2395_v59 }
0x1bd5   :  { %v2396_v8 = vmul.f32 %v2394_v9, %v2390_v52 }
0x1bd7   :  { %v2402_v10 = vadd.f32 %v2400_v63, %v2396_v8 }
0x1bd9   :  { %v2403_v11 = vpack.c.bf16 %v2402_v10, %v2401_v6 }
0x1bdb   :  { %3151 = vmatmul.mubr.msk.bf16.vlgmr.msra.gmra.mxu1 %vm65_vm1, %v2403_v11 }
0x1bdc   :  { %3178 = vmatprep.mubr.msk.bf16.mxu1 %vm3363_vm0, %v3362_v1  ;;  %3175 = vmatpush3.bf16.msra.mxu1 %v3258_v55 }
0x1bdd   :  { %3176 = vmatprep.subr.bf16.mxu1 %v3362_v1 }
0x1be0   :  { %3177 = vmatpush3.bf16.msra.mxu1 %v3259_v46 }
0x1c9b   :  { %v2453_v15 = vpop.f32.mrf.mxu1 }
0x1c9c   :  { %v2454_v17 = vadd.f32 %v2453_v15, %v2407_v13 }
0x1c9d   :  { %v3152_v16 = vpop.f32.mrf.mxu1 }
0x1c9e   :  { %v2460_v22 = vmax.f32 %v2454_v17, 0.0 }
0x1c9f   :  { %v2456_v19 = vpop.f32.mrf.mxu1 }
0x1ca0   :  { %v2457_v20 = vadd.f32 %v2456_v19, %v2407_v13 }
0x1ca1   :  { %v3153_v21 = vpop.f32.mrf.mxu1 }
0x1ca2   :  { %v2461_v23 = vmax.f32 %v2457_v20, 0.0 }
0x1ca4   :  { %v2462_v49 = vpack.c.bf16 %v2461_v23, %v2460_v22  ;;  %v2787_v22 = vld [vmem:[%s4027_s5] ss:$0 sm:$0xff] }
0x1ca6   :  { %3171 = vmatmul.mubr.bf16.vlgmr.msra.gmra.mxu0 %v2462_v49 }
0x1d66   :  { %v2549_v24 = vpop.f32.mrf.mxu0 }
0x1d67   :  { %v2550_v14 = vadd.f32 %v2549_v24, %v2466_v58 }
0x1d68   :  { %v3172_v0 = vpop.f32.mrf.mxu0 }
0x1d69   :  { %v2556_v25 = vadd.f32 %v2550_v14, %v2401_v6 }
0x1d6a   :  { %v2552_v53 = vpop.f32.mrf.mxu0 }
0x1d6b   :  { %v2553_v51 = vadd.f32 %v2552_v53, %v2466_v58  ;;  %v2558_v56 = vsel %vm65_vm1, %v2556_v25, 0.0 }
0x1d6c   :  { %2559 = vadd.xlane.f32.xlu1 %v2558_v56  ;;  %v3173_v3 = vpop.f32.mrf.mxu0 }
0x1d6d   :  { %v2557_v57 = vadd.f32 %v2553_v51, %v2402_v10 }
0x1d6f   :  { %v2561_v26 = vsel %vm65_vm1, %v2557_v57, 0.0 }
0x1d70   :  { %2562 = vadd.xlane.f32.xlu0 %v2561_v26 }
0x1df5   :  { %v2560_v4 = vpop.xlane.xlu1 %2559 }
0x1df6   :  { %v2564_v29 = vmul.f32 0.03125, %v2560_v4 }
0x1df8   :  { %v2566_v30 = vsub.f32 %v2556_v25, %v2564_v29 }
0x1df9   :  { %v2563_v5 = vpop.xlane.xlu0 %2562 }
0x1dfa   :  { %v2565_v31 = vmul.f32 0.03125, %v2563_v5  ;;  %v2568_v61 = vmul.f32 %v2566_v30, %v2566_v30 }
0x1dfc   :  { %v2567_v54 = vsub.f32 %v2557_v57, %v2565_v31  ;;  %v2570_v60 = vsel %vm65_vm1, %v2568_v61, 0.0 }
0x1dfd   :  { %2571 = vadd.xlane.f32.xlu1 %v2570_v60 }
0x1dfe   :  { %v2569_v45 = vmul.f32 %v2567_v54, %v2567_v54 }
0x1e00   :  { %v2573_v47 = vsel %vm65_vm1, %v2569_v45, 0.0 }
0x1e01   :  { %2574 = vadd.xlane.f32.xlu0 %v2573_v47 }
0x1e86   :  { %v2572_v62 = vpop.xlane.xlu1 %2571 }
0x1e87   :  { %v2576_v27 = vmul.f32 0.03125, %v2572_v62 }
0x1e89   :  { %v2578_v18 = vadd.f32 1e-05, %v2576_v27 }
0x1e8a   :  { %v2575_v28 = vpop.xlane.xlu0 %2574 }
0x1e8b   :  { %3336 = vrsqrt.f32 %v2578_v18  ;;  %v2577_v32 = vmul.f32 0.03125, %v2575_v28 }
0x1e8d   :  { %v2579_v33 = vadd.f32 1e-05, %v2577_v32 }
0x1e8f   :  { %3338 = vrsqrt.f32 %v2579_v33 }
0x1e98   :  { %v3337_v36 = vpop.eup %3336 }
0x1e99   :  { %v2582_v40 = vmul.f32 %v3337_v36, %v2566_v30 }
0x1e9b   :  { %v2588_v1 = vmul.f32 %v2587_v34, %v2582_v40 }
0x1e9c   :  { %v3339_v41 = vpop.eup %3338 }
0x1e9d   :  { %v2594_v42 = vadd.f32 %v2593_v37, %v2588_v1  ;;  %v2583_v43 = vmul.f32 %v3339_v41, %v2567_v54 }
0x1e9f   :  { %v2596_v44 = vsel %vm65_vm1, %v2594_v42, 0.0  ;;  %v2589_v9 = vmul.f32 %v2587_v34, %v2583_v43 }
0x1ea0   :  { %v2597_v50 = vrot.slane %v2596_v44, 4 }
0x1ea1   :  { %v2595_v52 = vadd.f32 %v2593_v37, %v2589_v9 }
0x1ea2   :  { %v2598_v59 = vadd.f32 %v2597_v50, %v2596_v44 }
0x1ea3   :  { %v2603_v63 = vsel %vm65_vm1, %v2595_v52, 0.0 }
0x1ea4   :  { %v2604_v8 = vrot.slane %v2603_v63, 4  ;;  %v2599_v2 = vrot.slane %v2598_v59, 2 }
0x1ea6   :  { %v2605_v6 = vadd.f32 %v2604_v8, %v2603_v63  ;;  %v2600_v10 = vadd.f32 %v2599_v2, %v2598_v59 }
0x1ea8   :  { %v2601_v7 = vrot.slane %v2600_v10, 1  ;;  %v2606_v11 = vrot.slane %v2605_v6, 2 }
0x1eaa   :  { %v2602_v38 = vadd.f32 %v2601_v7, %v2600_v10  ;;  %v2607_v48 = vadd.f32 %v2606_v11, %v2605_v6 }
0x1eac   :  { %v2608_v35 = vrot.slane %v2607_v48, 1  ;;  %v2611_v39 = vmul.f32 0.125, %v2602_v38 }
0x1eae   :  { %v2609_v12 = vadd.f32 %v2608_v35, %v2607_v48  ;;  %v2613_v15 = vpack.c.bf16 %v2611_v39, %v2611_v39 }
0x1eb0   :  { %v2612_v13 = vmul.f32 0.125, %v2609_v12  ;;  %v2628_v17 = vunpack.c.l.b16 %v2613_v15 }
0x1eb2   :  { %v2614_v16 = vpack.c.bf16 %v2612_v13, %v2612_v13 }
0x1eb4   :  { %v2629_v19 = vunpack.c.l.b16 %v2614_v16 }
0x1eb6   :  { %v2631_v20 = vsel %vm2630_vm6, %v2629_v19, %v2628_v17 }
0x1eb7   :  { %v2632_v21 = vpack.c.b16 %v2631_v20, %v2631_v20 }
0x1eb9   :  { %3179 = vmatmul.mubr.msk.bf16.vlgmr.msra.gmra.mxu1 %vm65_vm1, %v2632_v21 }
0x1f79   :  { %v2682_v23 = vpop.f32.mrf.mxu1 }
0x1f7a   :  { %v2683_v49 = vadd.f32 %v2787_v22, %v2682_v23 }
0x1f7b   :  { %v3180_v58 = vpop.f32.mrf.mxu1 }
0x1f7c   :  { %2689 = vst.msk [vmem:[#allocation2] sm:$0x3] %vm2688_vm7, %v2683_v49 }
0x1f7d   :  { %v2685_v24 = vpop.f32.mrf.mxu1 }
0x1f7e   :  { %3351 = shalt.err (!%p3348_p4)
}
0x1f7f   :  { %2699 = dma.vmem_to_hbm [thread:$0]  %s2697_s25, 32, %s4028_s6, [#allocation3]   ;;  %v3181_v14 = vpop.f32.mrf.mxu1 }
0x1f80   :  { %3360 = dma.done.wait [#allocation3], 32  }
0x1f81   :  { %3361 = vsyncadd [#allocation3], 4294967264 }
0x1f82   :  { %2703 = vsyncpa [#allocation3], 1 }

</bundles_post_ra>
